<compile_context>
chip_gen: v5e
topology: v5e:2x2
jax: 0.10.0
libtpu: 0.0.40
codegen_flags: <defaults>
</compile_context>

<pallas_src>
import functools
import math

import jax
import jax.numpy as jnp
import numpy as np
from jax import lax
from jax.experimental import pallas as pl
from jax.experimental.pallas import tpu as pltpu

# Explicit scoped-VMEM budget: >= v5e default (16 MiB), == v6e default,
# comfortably <= v7x physical (64 MiB).
_VMEM_LIMIT = 32 * 1024 * 1024


# ---------------------------------------------------------------------------
# Tiled, pipelined matmul kernel (fused qkv projection and the wo projection)
# ---------------------------------------------------------------------------
def _matmul_kernel(x_ref, w_ref, o_ref, acc_ref):
    @pl.when(pl.program_id(2) == 0)
    def _():
        acc_ref[...] = jnp.zeros_like(acc_ref)

    acc_ref[...] += jnp.dot(x_ref[...], w_ref[...],
                            preferred_element_type=jnp.float32)

    @pl.when(pl.program_id(2) == pl.num_programs(2) - 1)
    def _():
        o_ref[...] = acc_ref[...].astype(o_ref.dtype)


def _pick_tile(dim, pref, align):
    """Largest `align`-multiple divisor of `dim` that is <= pref.

    Falls back to the full dimension only if no aligned divisor exists
    (full-dim blocks are always layout-legal)."""
    if dim <= pref:
        return dim
    t = (pref // align) * align
    while t >= align:
        if dim % t == 0:
            return t
        t -= align
    return dim


def linear_pallas(x, w, *, out_dtype=None, tm=512, tk=512, tn=512):
    """y = x @ w  (nn.Linear(bias=False), weight stored as (in, out))."""
    M, K = x.shape
    N = w.shape[1]
    out_dtype = x.dtype if out_dtype is None else out_dtype
    tm = _pick_tile(M, tm, 8)      # second-to-last dims: multiples of 8
    tk = _pick_tile(K, tk, 128)    # lane dim of x / sublane of w
    tn = _pick_tile(N, tn, 128)    # lane dims: multiples of 128
    grid = (M // tm, N // tn, K // tk)
    return pl.pallas_call(
        _matmul_kernel,
        grid=grid,
        in_specs=[
            pl.BlockSpec((tm, tk), lambda i, j, k: (i, k)),
            pl.BlockSpec((tk, tn), lambda i, j, k: (k, j)),
        ],
        out_specs=pl.BlockSpec((tm, tn), lambda i, j, k: (i, j)),
        out_shape=jax.ShapeDtypeStruct((M, N), out_dtype),
        scratch_shapes=[pltpu.VMEM((tm, tn), jnp.float32)],
        compiler_params=pltpu.CompilerParams(
            dimension_semantics=("parallel", "parallel", "arbitrary"),
            vmem_limit_bytes=_VMEM_LIMIT),
    )(x, w)


# ---------------------------------------------------------------------------
# RoPE pre-rotation pass (applied once, outside the flash kv loop)
#   q/k arrive de-interleaved per head as [real half | imag half], so
#   rot(x) = x * [cos|cos] + roll(x, hd/2) * [-sin|sin]  (one lane roll).
# ---------------------------------------------------------------------------
def _rope_kernel(x_ref, cos_ref, sin_ref, o_ref, *, hd2):
    x = x_ref[...].astype(jnp.float32)
    o_ref[...] = (x * cos_ref[...] + pltpu.roll(x, hd2, 1) * sin_ref[...]
                  ).astype(o_ref.dtype)


def _seq_tile(S, pref):
    if S <= pref:
        return S
    t = (pref // 8) * 8
    while t >= 8:
        if S % t == 0:
            return t
        t -= 8
    return S


def rope_pallas(qkv, cos2, sin2, *, n_heads_slab, head_offset, hd, out_dtype,
                seq_block=512):
    """Rotate `n_heads_slab` heads starting at head-column `head_offset` of the
    (B, S, total_heads*hd) qkv slab; returns (B, S, n_heads_slab*hd)."""
    B, S, _ = qkv.shape
    tr = _seq_tile(S, seq_block)
    grid = (B, n_heads_slab, S // tr)
    return pl.pallas_call(
        functools.partial(_rope_kernel, hd2=hd // 2),
        grid=grid,
        in_specs=[
            pl.BlockSpec((None, tr, hd), lambda b, h, i: (b, i, head_offset + h)),
            pl.BlockSpec((tr, hd), lambda b, h, i: (i, 0)),
            pl.BlockSpec((tr, hd), lambda b, h, i: (i, 0)),
        ],
        out_specs=pl.BlockSpec((None, tr, hd), lambda b, h, i: (b, i, h)),
        out_shape=jax.ShapeDtypeStruct((B, S, n_heads_slab * hd), out_dtype),
        compiler_params=pltpu.CompilerParams(
            dimension_semantics=("parallel", "parallel", "parallel"),
            vmem_limit_bytes=_VMEM_LIMIT),
    )(qkv, cos2, sin2)


# ---------------------------------------------------------------------------
# Flash-style causal attention kernel
#   grid = (B, KVH, S//tq, S//tkv); one invocation handles the whole GQA group
#   (n_rep query heads) so K/V are fetched and used once per group.
# ---------------------------------------------------------------------------
def _flash_attn_kernel(q_ref, k_ref, v_ref, o_ref, m_sc, l_sc, acc_sc,
                       *, n_rep, hd, tq, tkv):
    qi = pl.program_id(2)
    kv = pl.program_id(3)

    @pl.when(kv == 0)
    def _init():
        m_sc[...] = jnp.full_like(m_sc, -jnp.inf)
        l_sc[...] = jnp.zeros_like(l_sc)
        acc_sc[...] = jnp.zeros_like(acc_sc)

    # Causal block skip: this kv block lies entirely above the diagonal.
    @pl.when(kv * tkv < (qi + 1) * tq)
    def _compute():
        k = k_ref[...]            # (tkv, hd) bf16, already rotated
        v = v_ref[...]            # (tkv, hd) bf16
        row = lax.broadcasted_iota(jnp.int32, (tq, tkv), 0) + qi * tq
        col = lax.broadcasted_iota(jnp.int32, (tq, tkv), 1) + kv * tkv
        causal = row >= col

        # Static unroll over the n_rep query heads of this GQA group; the
        # per-head q slice is a free lane slice of the (tq, n_rep*hd) block
        # and every head reuses the same K/V block.
        for r in range(n_rep):
            q_r = q_ref[:, r * hd:(r + 1) * hd]          # (tq, hd), pre-scaled
            s = lax.dot_general(q_r, k, (((1,), (1,)), ((), ())),
                                preferred_element_type=jnp.float32)
            # Large finite negative (not -inf) keeps exp() NaN-free.
            s = jnp.where(causal, s, -1e30)

            m_prev = m_sc[r]
            m_new = jnp.maximum(m_prev, jnp.max(s, axis=-1, keepdims=True))
            alpha = jnp.exp(m_prev - m_new)
            p = jnp.exp(s - m_new)
            l_sc[r] = alpha * l_sc[r] + jnp.sum(p, axis=-1, keepdims=True)
            acc_sc[r] = alpha * acc_sc[r] + jnp.dot(
                p.astype(v.dtype), v, preferred_element_type=jnp.float32)
            m_sc[r] = m_new

    @pl.when(kv == pl.num_programs(3) - 1)
    def _finalize():
        for r in range(n_rep):
            o_ref[:, r * hd:(r + 1) * hd] = (
                acc_sc[r] / l_sc[r]).astype(o_ref.dtype)


# ---------------------------------------------------------------------------
# Parameter prep helpers
# ---------------------------------------------------------------------------
def _deinterleave_heads(w, n_heads_w, hd):
    """Permute the output columns of a (in, n_heads_w*hd) projection so each
    head's columns are [even(real)... | odd(imag)...] instead of interleaved.
    A consistent permutation of the contraction axis leaves q.k unchanged."""
    din = w.shape[0]
    w4 = w.reshape(din, n_heads_w, hd // 2, 2)
    return jnp.concatenate([w4[..., 0], w4[..., 1]], axis=-1
                           ).reshape(din, n_heads_w * hd)


# ---------------------------------------------------------------------------
# Module forward
# ---------------------------------------------------------------------------
def attention_forward(x, freqs_cos, freqs_sin, params, n_heads, n_kv_heads, *,
                      q_block=256, kv_block=512, compute_dtype=jnp.bfloat16):
    B, S, dim = x.shape
    H, KVH = n_heads, n_kv_heads
    hd = params["wq"].shape[1] // H
    n_rep = H // KVH
    scale = 1.0 / math.sqrt(hd)

    # --- parameter / table prep (one-time at weight-load in real use) ---
    wq = _deinterleave_heads(params["wq"], H, hd)
    wk = _deinterleave_heads(params["wk"], KVH, hd)
    wqkv = jnp.concatenate([wq, wk, params["wv"]], axis=1).astype(compute_dtype)
    wo = params["wo"].astype(compute_dtype)

    # Rotation tables matched to the de-interleaved [real | imag] layout.
    cos2 = jnp.concatenate([freqs_cos, freqs_cos], axis=-1).astype(jnp.float32)
    sin2 = jnp.concatenate([-freqs_sin, freqs_sin], axis=-1).astype(jnp.float32)
    # Fold the softmax scale into q's f32 rotation tables.
    cos_q, sin_q = cos2 * scale, sin2 * scale

    # --- fused q/k/v projection: one tiled matmul, x read once ---
    xf = x.reshape(B * S, dim).astype(compute_dtype)
    qkv = linear_pallas(xf, wqkv, out_dtype=compute_dtype)
    qkv = qkv.reshape(B, S, (H + 2 * KVH) * hd)

    # --- RoPE applied once (outside the flash kv loop) ---
    q_rot = rope_pallas(qkv, cos_q, sin_q, n_heads_slab=H, head_offset=0,
                        hd=hd, out_dtype=compute_dtype)
    k_rot = rope_pallas(qkv, cos2, sin2, n_heads_slab=KVH, head_offset=H,
                        hd=hd, out_dtype=compute_dtype)

    # --- flash attention: grid (B, KVH, S/tq, S/tkv), GQA group per call ---
    tq = _seq_tile(S, q_block)
    tkv = _seq_tile(S, kv_block)
    grid = (B, KVH, S // tq, S // tkv)

    q_map = lambda b, g, i, j: (b, i, g)                 # (tq, n_rep*hd) block
    k_map = lambda b, g, i, j: (b, j, g)                 # kv head g of k_rot
    v_map = lambda b, g, i, j: (b, j, H + KVH + g)       # v columns of qkv slab
    o_map = lambda b, g, i, j: (b, i, g)

    cost = pl.CostEstimate(
        flops=int(2 * B * H * S * S * hd),               # causal ~halves 4*B*H*S*S*hd
        transcendentals=int(B * H * S * S // 2),
        bytes_accessed=int(2 * (2 * B * S * H * hd
                                + 2 * B * S * KVH * hd * max(1, S // tq))),
    )

    attn = pl.pallas_call(
        functools.partial(_flash_attn_kernel, n_rep=n_rep, hd=hd, tq=tq, tkv=tkv),
        grid=grid,
        in_specs=[
            pl.BlockSpec((None, tq, n_rep * hd), q_map),  # q_rot (B, S, H*hd)
            pl.BlockSpec((None, tkv, hd), k_map),         # k_rot (B, S, KVH*hd)
            pl.BlockSpec((None, tkv, hd), v_map),         # v from qkv slab
        ],
        out_specs=pl.BlockSpec((None, tq, n_rep * hd), o_map),
        out_shape=jax.ShapeDtypeStruct((B, S, H * hd), compute_dtype),
        scratch_shapes=[
            pltpu.VMEM((n_rep, tq, 1), jnp.float32),    # running max m
            pltpu.VMEM((n_rep, tq, 1), jnp.float32),    # running denom l
            pltpu.VMEM((n_rep, tq, hd), jnp.float32),   # output accumulator
        ],
        compiler_params=pltpu.CompilerParams(
            dimension_semantics=("parallel", "parallel", "parallel", "arbitrary"),
            vmem_limit_bytes=_VMEM_LIMIT),
        cost_estimate=cost,
    )(q_rot, k_rot, qkv)

    # Output is already (B, S, H*hd) token-major / lane-dense -> straight into wo.
    out = linear_pallas(attn.reshape(B * S, H * hd), wo, out_dtype=jnp.float32)
    return out.reshape(B, S, dim)


# ---------------------------------------------------------------------------
# Pure-JAX reference mirroring the PyTorch forward at the same bf16/f32 mixed
# precision (interleaved RoPE layout, explicit repeat_kv, -inf additive mask,
# standard softmax).  The softmax scale is applied to q before the bf16 cast,
# which is mathematically identical to dividing the scores and mirrors the
# kernel's scale-folded rotation.
# ---------------------------------------------------------------------------
def reference_attention(x, freqs_cos, freqs_sin, params, n_heads, n_kv_heads,
                        compute_dtype=jnp.bfloat16):
    B, S, dim = x.shape
    H, KVH = n_heads, n_kv_heads
    hd = params["wq"].shape[1] // H
    n_rep = H // KVH
    scale = 1.0 / math.sqrt(hd)

    def mm(a, b):
        return jnp.einsum("...d,de->...e", a.astype(compute_dtype),
                          b.astype(compute_dtype),
                          preferred_element_type=jnp.float32)

    xq = mm(x, params["wq"]).astype(compute_dtype).astype(jnp.float32)
    xk = mm(x, params["wk"]).astype(compute_dtype).astype(jnp.float32)
    xv = mm(x, params["wv"]).astype(compute_dtype)
    xq = xq.reshape(B, S, H, hd)
    xk = xk.reshape(B, S, KVH, hd)
    xv = xv.reshape(B, S, KVH, hd)

    def rope(t):
        t2 = t.reshape(t.shape[:-1] + (hd // 2, 2))
        r, i = t2[..., 0], t2[..., 1]
        c = freqs_cos[None, :, None, :]
        s = freqs_sin[None, :, None, :]
        return jnp.stack([r * c - i * s, r * s + i * c], axis=-1).reshape(t.shape)

    xq = rope(xq) * scale
    xk = rope(xk)
    xk = jnp.repeat(xk, n_rep, axis=2)
    xv = jnp.repeat(xv, n_rep, axis=2)

    q = xq.transpose(0, 2, 1, 3).astype(compute_dtype)
    k = xk.transpose(0, 2, 1, 3).astype(compute_dtype)
    v = xv.transpose(0, 2, 1, 3)

    scores = jnp.einsum("bhqd,bhkd->bhqk", q, k,
                        preferred_element_type=jnp.float32)
    mask = jnp.triu(jnp.full((S, S), -jnp.inf, dtype=jnp.float32), k=1)
    scores = scores + mask[None, None]
    p = jax.nn.softmax(scores, axis=-1)
    out = jnp.einsum("bhqk,bhkd->bhqd", p.astype(compute_dtype), v,
                     preferred_element_type=jnp.float32)
    out = out.transpose(0, 2, 1, 3).reshape(B, S, H * hd)
    return mm(out, params["wo"])


# ---------------------------------------------------------------------------
# Main
# ---------------------------------------------------------------------------
if __name__ == "__main__":
    # Small shapes consistent with the module: head_dim = dim / n_heads = 128
    # (lane-dense), GQA with n_rep = 2 and multiple kv heads so the group /
    # head-column indexing is exercised.
    B, S = 2, 16
    n_heads, n_kv_heads = 4, 2
    hd = 128
    dim = n_heads * hd

    key = jax.random.PRNGKey(0)
    kx, kq, kk, kv_, ko = jax.random.split(key, 5)
    x = jax.random.normal(kx, (B, S, dim), dtype=jnp.float32)
    params = {
        "wq": jax.random.normal(kq, (dim, n_heads * hd), jnp.float32) * 0.1,
        "wk": jax.random.normal(kk, (dim, n_kv_heads * hd), jnp.float32) * 0.1,
        "wv": jax.random.normal(kv_, (dim, n_kv_heads * hd), jnp.float32) * 0.1,
        "wo": jax.random.normal(ko, (n_heads * hd, dim), jnp.float32) * 0.1,
    }

    # llama-style rotary frequencies: (seq, head_dim // 2)
    inv_freq = 1.0 / (10000.0 ** (jnp.arange(0, hd, 2, dtype=jnp.float32) / hd))
    angles = jnp.outer(jnp.arange(S, dtype=jnp.float32), inv_freq)
    freqs_cos = jnp.cos(angles)
    freqs_sin = jnp.sin(angles)

    # Small q/kv blocks so this tiny test still exercises q-tiling, the causal
    # block skip and the multi-step online softmax.
    out = attention_forward(x, freqs_cos, freqs_sin, params, n_heads,
                            n_kv_heads, q_block=8, kv_block=8)
    out = jax.block_until_ready(out)
    assert out.shape == (B, S, dim)

    ref = reference_attention(x, freqs_cos, freqs_sin, params, n_heads,
                              n_kv_heads)
    out_np, ref_np = np.asarray(out), np.asarray(ref)

    # End-to-end bf16 mixed precision (outputs are O(3)): element-wise ~3%
    # tolerance plus a tighter global (relative Frobenius) check that would
    # catch any systematic error (wrong mask / head indexing / normalization).
    np.testing.assert_allclose(out_np, ref_np, atol=1e-1, rtol=1e-1)
    rel = np.linalg.norm(out_np - ref_np) / np.linalg.norm(ref_np)
    assert rel < 1e-2, f"relative Frobenius error too high: {rel}"

    print("KERNEL_OK")
</pallas_src>

<mosaic_0001>
module attributes {stable_mosaic.version = 11 : i64} {
  func.func @_matmul_kernel(%arg0: i32, %arg1: i32, %arg2: i32, %arg3: memref<32x512xbf16, #tpu.memory_space<vmem>>, %arg4: memref<512x512xbf16, #tpu.memory_space<vmem>>, %arg5: memref<32x512xbf16, #tpu.memory_space<vmem>>, %arg6: memref<32x512xf32, #tpu.memory_space<vmem>>) attributes {dimension_semantics = [#tpu.dimension_semantics<parallel>, #tpu.dimension_semantics<parallel>, #tpu.dimension_semantics<arbitrary>], iteration_bounds = array<i64: 1, 2, 1>, scalar_prefetch = 0 : i64, scratch_operands = 1 : i64, tpu.core_type = #tpu.core_type<tc>, window_params = [{transform_indices = @transform_0, window_bounds = array<i64: 32, 512>}, {transform_indices = @transform_1, window_bounds = array<i64: 512, 512>}, {transform_indices = @transform_2, window_bounds = array<i64: 32, 512>}]} {
    %c0_i32 = arith.constant 0 : i32
    %0 = arith.cmpi eq, %arg2, %c0_i32 : i32
    %1 = arith.extui %0 : i1 to i32
    %c0_i32_0 = arith.constant 0 : i32
    %2 = arith.cmpi ne, %1, %c0_i32_0 : i32
    scf.if %2 {
      %cst_10 = arith.constant 0.000000e+00 : f32
      %12 = vector.broadcast %cst_10 : f32 to vector<32x512xf32>
      %c0_11 = arith.constant 0 : index
      %c0_12 = arith.constant 0 : index
      %13 = vector.load %arg6[%c0_11, %c0_12] : memref<32x512xf32, #tpu.memory_space<vmem>>, vector<32x512xf32>
      tpu.vector_store %arg6[%c0_11, %c0_12], %12 {strides = array<i32>} : memref<32x512xf32, #tpu.memory_space<vmem>>, vector<32x512xf32>,
    } else {
    }
    %c0 = arith.constant 0 : index
    %c0_1 = arith.constant 0 : index
    %3 = vector.load %arg6[%c0, %c0_1] : memref<32x512xf32, #tpu.memory_space<vmem>>, vector<32x512xf32>
    %c0_2 = arith.constant 0 : index
    %c0_3 = arith.constant 0 : index
    %4 = vector.load %arg3[%c0_2, %c0_3] : memref<32x512xbf16, #tpu.memory_space<vmem>>, vector<32x512xbf16>
    %c0_4 = arith.constant 0 : index
    %c0_5 = arith.constant 0 : index
    %5 = vector.load %arg4[%c0_4, %c0_5] : memref<512x512xbf16, #tpu.memory_space<vmem>>, vector<512x512xbf16>
    %cst = arith.constant dense<0.000000e+00> : vector<32x512xf32>
    %6 = tpu.matmul %4, %5, %cst {dimension_numbers = #tpu.dot_dimension_numbers<[1], [0], [0], [1], [0, 0, 1, 1], [], []>} : vector<32x512xbf16>, vector<512x512xbf16>, vector<32x512xf32> -> vector<32x512xf32>
    %7 = arith.addf %3, %6 : vector<32x512xf32>
    %c0_6 = arith.constant 0 : index
    %c0_7 = arith.constant 0 : index
    %8 = vector.load %arg6[%c0_6, %c0_7] : memref<32x512xf32, #tpu.memory_space<vmem>>, vector<32x512xf32>
    tpu.vector_store %arg6[%c0_6, %c0_7], %7 {strides = array<i32>} : memref<32x512xf32, #tpu.memory_space<vmem>>, vector<32x512xf32>,
    %c0_i32_8 = arith.constant 0 : i32
    %9 = arith.cmpi eq, %arg2, %c0_i32_8 : i32
    %10 = arith.extui %9 : i1 to i32
    %c0_i32_9 = arith.constant 0 : i32
    %11 = arith.cmpi ne, %10, %c0_i32_9 : i32
    scf.if %11 {
      %c0_10 = arith.constant 0 : index
      %c0_11 = arith.constant 0 : index
      %12 = vector.load %arg6[%c0_10, %c0_11] : memref<32x512xf32, #tpu.memory_space<vmem>>, vector<32x512xf32>
      %13 = arith.truncf %12 : vector<32x512xf32> to vector<32x512xbf16>
      %c0_12 = arith.constant 0 : index
      %c0_13 = arith.constant 0 : index
      %14 = vector.load %arg5[%c0_12, %c0_13] : memref<32x512xbf16, #tpu.memory_space<vmem>>, vector<32x512xbf16>
      tpu.vector_store %arg5[%c0_12, %c0_13], %13 {strides = array<i32>} : memref<32x512xbf16, #tpu.memory_space<vmem>>, vector<32x512xbf16>,
    } else {
    }
    return
  }
  func.func @transform_0(%arg0: i32, %arg1: i32, %arg2: i32) -> (i32, i32) {
    %c0_i32 = arith.constant 0 : i32
    return %arg0, %arg2 : i32, i32
  }
  func.func @transform_1(%arg0: i32, %arg1: i32, %arg2: i32) -> (i32, i32) {
    %c0_i32 = arith.constant 0 : i32
    return %arg2, %arg1 : i32, i32
  }
  func.func @transform_2(%arg0: i32, %arg1: i32, %arg2: i32) -> (i32, i32) {
    %c0_i32 = arith.constant 0 : i32
    return %arg0, %arg1 : i32, i32
  }
}

</mosaic_0001>

<bundles_post_ra>
// kernel: tpu_custom_call.1
= control target key start
LH: loop header
LB: loop body
LE: loop exit
PB: predicated region body
PF: predicated region fallthrough
CT: control target
= control target key end

     0   :  { %7 = vsyncpa [#allocation4], 0  ;;  %s2995_s0 = inlined_call_operand.hbm [shape: bf16[32,512], index: 0, kind: input, shape index: {}]   ;;  %s2996_s1 = inlined_call_operand.hbm [shape: bf16[512,1024], index: 1, kind: input, shape index: {}]   ;;  %s2997_s2 = inlined_call_operand.hbm [shape: bf16[32,1024], index: 2, kind: output, shape index: {}]  }
   0x1   :  { %8 = vsyncpa [#allocation7], 0 }
   0x2   :  { %10 = vsyncpa [#allocation7 + $0x1], 0 }
   0x3   :  { %11 = vsyncpa [#allocation5], 0 }
   0x4   :  { %13 = vsyncpa [#allocation5 + $0x1], 0  ;;  %s2523_s9 = smov 0   ;;  %s2525_s10 = smov 0  }
   0x5   :  { %s2527_s11 = smov 0   ;;  %s2529_s12 = smov 0  }
   0x6   :  { %s2531_s13 = smov 0   ;;  %s2533_s14 = smov 0  }
   0x7 LB: > { %s1575_s15 = sadd.s32 4294967295, %s2499_s14   ;;  %s1576_s16 = sadd.s32 4294967294, %s2499_s14   ;;  %s2499_s14 = sphi %s2533_s14, %s19_s14   ;;  %s2495_s13 = sphi %s2531_s13, %s3011_s13   ;;  %s2491_s12 = sphi %s2529_s12, %s3010_s12   ;;  %s2487_s11 = sphi %s2527_s11, %s3009_s11   ;;  %s2483_s10 = sphi %s2525_s10, %s3008_s10   ;;  %s2479_s9 = sphi %s2523_s9, %s3007_s9  }
   0x8   : > { %p88_p0 = scmp.ne.s32.totalorder %s2483_s10, %s2479_s9  ;;  %p2557_p1 = scmp.eq.s32.totalorder %s1575_s15, 0 }
   0x9   : > { %p2561_p2 = scmp.eq.s32.totalorder %s1575_s15, 1  ;;  %p120_p3 = scmp.eq.s32.totalorder %s1576_s16, 1 }
   0xa   : > { %p2567_p4 = por %p2557_p1, %p88_p0  ;;  %p1577_p5 = scmp.ge.s32.totalorder %s2499_s14, 1 }
   0xb   : > { %p2572_p6 = por %p120_p3, %p88_p0  ;;  %p127_p7 = scmp.lt.s32.totalorder %s2499_s14, 3 }
   0xc   : > { %s144_s23 = sshll.u32 %s2995_s0, 4  ;;  %s2501_s25 = smov [#allocation3]   ;;  %s145_s23 = int_to_ptr.hbm [resolvable:$true] %s144_s23 }
   0xd   : > { %p2580_p8 = pnand %p1577_p5, %p127_p7  ;;  %s146_s26 = sshll.u32 %s2501_s25, 4  ;;  %s147_s26 = int_to_ptr.vmem [resolvable:$true] %s146_s26 }
   0xe   : > { %p1579_p11 = scmp.ge.s32.totalorder %s2499_s14, 2  ;;  %s2998_s27 = smov 256  }
   0xf   : > { %p2282_p9 = pneg %p2580_p8  ;;  %s2503_s28 = smov 16  }
  0x10   : > { %s34_s29 = sadd.s32 1, %s2495_s13  ;;  %s75_s30 = sadd.s32 1, %s2487_s11 }
  0x11   : > { %p2283_p10 = pnand %p2282_p9, %p2557_p1  ;;  %p36_p12 = scmp.ge.s32.totalorder %s34_s29, 2 }
  0x12   : > { %p82_p13 = scmp.ne.s32.totalorder %s2487_s11, %s2483_s10  ;;  %p83_p0 = scmp.eq.s32.totalorder %s2499_s14, 0 }
  0x13   : > { %2285 = dma.hbm_to_vmem [thread:$0]  (!%p2283_p10), %s145_s23, 1024, %s147_s26, [#allocation4], %s2998_s27, %s2998_s27, %s2503_s28  }
  0x14   : > { %s3013_s29 = smov (%p36_p12, %s34_s29), 0  ;;  %p2599_p3 = por %p83_p0, %p82_p13 }
  0x15   : > { %p2605_p5 = por %p2561_p2, %p82_p13  ;;  %s71_s5 = ssub.s32 %s2495_s13, %s3013_s29 }
  0x16   : > { %p2295_p7 = scmp.lt.s32.totalorder %s2499_s14, 2  ;;  %p73_p9 = scmp.eq.s32.totalorder %s71_s5, 0 }
  0x17   : > { %s160_s6 = sand.u32 1, %s2487_s11   ;;  %s2136_s15 = sshll.u32 %s2495_s13, 4 }
  0x18   : > { %s1580_s7 = sshll.u32 %s160_s6, 10  ;;  %s172_s22 = scalar_lea.hbm %s2996_s1, %s2136_s15 }
  0x19   : > { %s2614_s8 = scalar_select %p73_p9, %s2487_s11, %s75_s30  }
  0x1a   : > { %s164_s23 = scalar_lea.vmem [#allocation6], %s1580_s7  ;;  %s173_s18 = sshll.u32 %s172_s22, 4  ;;  %s174_s18 = int_to_ptr.hbm [resolvable:$true] %s173_s18 }
  0x1b   : > { %s175_s25 = sshll.u32 %s164_s23, 4  ;;  %p2287_p2 = pnand %p2295_p7, %p2599_p3  ;;  %s176_s25 = int_to_ptr.vmem [resolvable:$true] %s175_s25 }
  0x1c   : > { %s161_s26 = scalar_lea.sflag [#allocation7], %s160_s6  ;;  %s2504_s27 = smov 512  }
  0x1d   : > { %s3006_s5 = smov 256   ;;  %187 = sbr.rel (%p2580_p8) target bundleno = 339 (0x153), region = 28 }
  0x1e   : > { %2289 = dma.hbm_to_vmem [thread:$0]  (!%p2287_p2), %s174_s18, 16384, %s176_s25, %s161_s26, %s2504_s27, %s3006_s5, %s2503_s28  }
  0x22   : > { %2466 = dma.done.wait (%p2557_p1), [#allocation4], 1024  }
  0x23   : > { %2468 = vsyncadd (%p2557_p1), [#allocation4], 4294966272  ;;  %s2631_s30 = sand.u32 1, %s2483_s10  }
  0x24   : > { %s1585_s3 = sshll.u32 %s2631_s30, 10  ;;  %s195_s6 = scalar_lea.sflag [#allocation7], %s2631_s30 }
  0x25   : > { %s2635_s7 = scalar_lea.vmem [#allocation6], %s1585_s3 }
  0x26   : > { %2470 = dma.done.wait (%p2567_p4), %s195_s6, 16384  }
  0x27   : > { %2472 = vsyncadd (%p2567_p4), %s195_s6, 4294950912  ;;  %v1733_v0 = vld [vmem:[%s2635_s7 + $0xe0] sm:$0xf]  ;;  %v2175_v1 = vld [vmem:[%s2635_s7 + $0xec] sm:$0xf0]  ;;  %s1586_s17 = sshll.u32 %s2631_s30, 6 }
  0x28   : > { %v1861_v2 = vld [vmem:[%s2635_s7 + $0x1e0] sm:$0xf]  ;;  %v1734_v3 = vor.u32 %v2175_v1, %v1733_v0  ;;  %v2207_v4 = vld [vmem:[%s2635_s7 + $0x1ec] sm:$0xf0]  ;;  %s2946_s19 = scalar_lea.vmem [#allocation8], %s1586_s17  ;;  %s2273_s24 = sshll.u32 %s2491_s12, 4 }
  0x29   : > { %v1989_v5 = vld [vmem:[%s2635_s7 + $0x2e0] sm:$0xf]  ;;  %v2239_v6 = vld [vmem:[%s2635_s7 + $0x2ec] sm:$0xf0]  ;;  %v1862_v7 = vor.u32 %v2207_v4, %v1861_v2  ;;  %s1464_s15 = scalar_lea.hbm %s2997_s2, %s2273_s24  ;;  %s1465_s16 = sshll.u32 %s2946_s19, 4  ;;  %s1466_s16 = int_to_ptr.vmem [resolvable:$true] %s1465_s16 }
  0x2a   : > { %v1990_v8 = vor.u32 %v2239_v6, %v1989_v5  ;;  %v2117_v9 = vld [vmem:[%s2635_s7 + $0x3e0] sm:$0xf]  ;;  %v2271_v10 = vld [vmem:[%s2635_s7 + $0x3ec] sm:$0xf0]  ;;  %1078 = vmatpush.bf16.msra.mxu0 %v1734_v3  ;;  %s1467_s21 = sshll.u32 %s1464_s15, 4  ;;  %s1450_s12 = scalar_lea.sflag [#allocation5], %s2631_s30  ;;  %s1468_s21 = int_to_ptr.hbm [resolvable:$true] %s1467_s21 }
  0x2b   : > { %v1717_v11 = vld [vmem:[%s2635_s7 + $0xc0] sm:$0xf]  ;;  %v2118_v12 = vor.u32 %v2271_v10, %v2117_v9  ;;  %v2171_v13 = vld [vmem:[%s2635_s7 + $0xcc] sm:$0xf0]  ;;  %1097 = vmatpush.bf16.msra.mxu1 %v1862_v7  ;;  %s2427_s22 = sshra.s32 %s1468_s21, 4  ;;  %s2433_s26 = scalar_lea.hbm %s2997_s2, 128  ;;  %s2428_s22 = int_to_ptr.hbm [resolvable:$true] %s2427_s22 }
  0x2c   : > { %v1845_v14 = vld [vmem:[%s2635_s7 + $0x1c0] sm:$0xf]  ;;  %v2203_v15 = vld [vmem:[%s2635_s7 + $0x1cc] sm:$0xf0]  ;;  %1116 = vmatpush.bf16.msra.mxu2 %v1990_v8  ;;  %v1718_v16 = vor.u32 %v2171_v13, %v1717_v11  ;;  %s2429_s23 = scalar_lea.hbm %s2428_s22, 64  ;;  %p2434_p10 = scmp.lt.s32.totalorder %s2428_s22, %s2997_s2 }
  0x2d   : > { %v1846_v17 = vor.u32 %v2203_v15, %v1845_v14  ;;  %v1973_v18 = vld [vmem:[%s2635_s7 + $0x2c0] sm:$0xf]  ;;  %v2235_v19 = vld [vmem:[%s2635_s7 + $0x2cc] sm:$0xf0]  ;;  %1135 = vmatpush.bf16.msra.mxu3 %v2118_v12  ;;  %p2430_p1 = scmp.ne.s32.totalorder %s2428_s22, %s2429_s23  ;;  %p2435_p12 = scmp.lt.s32.totalorder %s2433_s26, %s2429_s23 }
  0x2e   : > { %v2101_v20 = vld [vmem:[%s2635_s7 + $0x3c0] sm:$0xf]  ;;  %v1974_v21 = vor.u32 %v2235_v19, %v1973_v18  ;;  %v2267_v22 = vld [vmem:[%s2635_s7 + $0x3cc] sm:$0xf0]  ;;  %1079 = vmatpush.bf16.msra.mxu0 %v1718_v16 }
  0x2f   : > { %v1701_v23 = vld [vmem:[%s2635_s7 + $0xa0] sm:$0xf]  ;;  %v2167_v24 = vld [vmem:[%s2635_s7 + $0xac] sm:$0xf0]  ;;  %v2102_v25 = vor.u32 %v2267_v22, %v2101_v20  ;;  %1098 = vmatpush.bf16.msra.mxu1 %v1846_v17  ;;  %p2431_p4 = pnand %p2430_p1, %p2605_p5  ;;  %p2436_p13 = por %p2435_p12, %p2434_p10 }
  0x30   : > { %v1829_v26 = vld [vmem:[%s2635_s7 + $0x1a0] sm:$0xf]  ;;  %v2199_v27 = vld [vmem:[%s2635_s7 + $0x1ac] sm:$0xf0]  ;;  %v1702_v29 = vor.u32 %v2167_v24, %v1701_v23  ;;  %1117 = vmatpush.bf16.msra.mxu2 %v1974_v21 }
  0x31   : > { %v1957_v28 = vld [vmem:[%s2635_s7 + $0x2a0] sm:$0xf]  ;;  %v2231_v30 = vld [vmem:[%s2635_s7 + $0x2ac] sm:$0xf0]  ;;  %v1830_v33 = vor.u32 %v2199_v27, %v1829_v26  ;;  %1136 = vmatpush.bf16.msra.mxu3 %v2102_v25  ;;  %p2432_p8 = pneg %p2431_p4 }
  0x32   : > { %v2085_v31 = vld [vmem:[%s2635_s7 + $0x3a0] sm:$0xf]  ;;  %v2263_v32 = vld [vmem:[%s2635_s7 + $0x3ac] sm:$0xf0]  ;;  %v1958_v34 = vor.u32 %v2231_v30, %v1957_v28  ;;  %1080 = vmatpush.bf16.msra.mxu0 %v1702_v29  ;;  %v2137_v30 = vld [vmem:[#allocation3 + $0x4] sm:$0xf] }
  0x33   : > { %v1685_v35 = vld [vmem:[%s2635_s7 + $0x80] sm:$0xf]  ;;  %v2163_v36 = vld [vmem:[%s2635_s7 + $0x8c] sm:$0xf0]  ;;  %v2086_v38 = vor.u32 %v2263_v32, %v2085_v31  ;;  %1099 = vmatpush.bf16.msra.mxu1 %v1830_v33  ;;  %v1591_v31 = vld [vmem:[#allocation3 + $0x10] sm:$0xf0]  ;;  %p2437_p0 = pnand %p2436_p13, %p2432_p8 }
  0x34   : > { %v1813_v37 = vld [vmem:[%s2635_s7 + $0x180] sm:$0xf]  ;;  %v2195_v39 = vld [vmem:[%s2635_s7 + $0x18c] sm:$0xf0]  ;;  %v1686_v44 = vor.u32 %v2163_v36, %v1685_v35  ;;  %1118 = vmatpush.bf16.msra.mxu2 %v1958_v34  ;;  %v2237_v32 = vld [vmem:[%s2635_s7 + $0x2e4] sm:$0xf] }
  0x35   : > { %v1941_v40 = vld [vmem:[%s2635_s7 + $0x280] sm:$0xf]  ;;  %v2227_v41 = vld [vmem:[%s2635_s7 + $0x28c] sm:$0xf0]  ;;  %v1814_v45 = vor.u32 %v2195_v39, %v1813_v37  ;;  %1137 = vmatpush.bf16.msra.mxu3 %v2086_v38  ;;  %v1991_v33 = vld [vmem:[%s2635_s7 + $0x2f0] sm:$0xf0] }
  0x36   : > { %v2069_v42 = vld [vmem:[%s2635_s7 + $0x380] sm:$0xf]  ;;  %v2259_v43 = vld [vmem:[%s2635_s7 + $0x38c] sm:$0xf0]  ;;  %v1942_v46 = vor.u32 %v2227_v41, %v1941_v40  ;;  %1081 = vmatpush.bf16.msra.mxu0 %v1686_v44  ;;  %v1597_v35 = vld [vmem:[#allocation3 + $0x8] sm:$0xf]  ;;  %v1994_v44 = vor.u32 %v2237_v32, %v1991_v33 }
  0x37   : > { %v1669_v47 = vld [vmem:[%s2635_s7 + $0x60] sm:$0xf]  ;;  %v2159_v48 = vld [vmem:[%s2635_s7 + $0x6c] sm:$0xf0]  ;;  %v2070_v50 = vor.u32 %v2259_v43, %v2069_v42  ;;  %1100 = vmatpush.bf16.msra.mxu1 %v1814_v45  ;;  %v2205_v36 = vld [vmem:[%s2635_s7 + $0x1e4] sm:$0xf] }
  0x38   : > { %v1797_v49 = vld [vmem:[%s2635_s7 + $0x160] sm:$0xf]  ;;  %v2191_v51 = vld [vmem:[%s2635_s7 + $0x16c] sm:$0xf0]  ;;  %v1670_v56 = vor.u32 %v2159_v48, %v1669_v47  ;;  %1119 = vmatpush.bf16.msra.mxu2 %v1942_v46  ;;  %v1863_v37 = vld [vmem:[%s2635_s7 + $0x1f0] sm:$0xf0] }
  0x39   : > { %v1925_v52 = vld [vmem:[%s2635_s7 + $0x260] sm:$0xf]  ;;  %v2223_v53 = vld [vmem:[%s2635_s7 + $0x26c] sm:$0xf0]  ;;  %v1798_v57 = vor.u32 %v2191_v51, %v1797_v49  ;;  %1138 = vmatpush.bf16.msra.mxu3 %v2070_v50  ;;  %v2140_v40 = vld [vmem:[#allocation3 + $0x14] sm:$0xf0]  ;;  %v1866_v49 = vor.u32 %v2205_v36, %v1863_v37 }
  0x3a   : > { %v2053_v54 = vld [vmem:[%s2635_s7 + $0x360] sm:$0xf]  ;;  %v2255_v55 = vld [vmem:[%s2635_s7 + $0x36c] sm:$0xf0]  ;;  %v1926_v58 = vor.u32 %v2223_v53, %v1925_v52  ;;  %1082 = vmatpush.bf16.msra.mxu0 %v1670_v56  ;;  %v2138_v41 = vld [vmem:[#allocation3 + $0xc] sm:$0xf]  ;;  %v2717_v53 = vor.u32 %v2137_v30, %v1591_v31 }
  0x3b   : > { %v1653_v59 = vld [vmem:[%s2635_s7 + $0x40] sm:$0xf]  ;;  %v2155_v60 = vld [vmem:[%s2635_s7 + $0x4c] sm:$0xf0]  ;;  %v2054_v62 = vor.u32 %v2255_v55, %v2053_v54  ;;  %1101 = vmatpush.bf16.msra.mxu1 %v1798_v57  ;;  %v1599_v42 = vld [vmem:[#allocation3 + $0x18] sm:$0xf0]  ;;  %v2719_v54 = vor.u32 %v2140_v40, %v1597_v35 }
  0x3c   : > { %v1781_v61 = vld [vmem:[%s2635_s7 + $0x140] sm:$0xf]  ;;  %v2187_v63 = vld [vmem:[%s2635_s7 + $0x14c] sm:$0xf0]  ;;  %v1654_v4 = vor.u32 %v2155_v60, %v1653_v59  ;;  %1120 = vmatpush.bf16.msra.mxu2 %v1926_v58  ;;  %v2173_v45 = vld [vmem:[%s2635_s7 + $0xe4] sm:$0xf]  ;;  %v2723_v57 = vor.u32 %v2138_v41, %v1599_v42 }
  0x3d   : > { %v1909_v0 = vld [vmem:[%s2635_s7 + $0x240] sm:$0xf]  ;;  %v2219_v1 = vld [vmem:[%s2635_s7 + $0x24c] sm:$0xf0]  ;;  %v1782_v5 = vor.u32 %v2187_v63, %v1781_v61  ;;  %1139 = vmatpush.bf16.msra.mxu3 %v2054_v62  ;;  %v1735_v46 = vld [vmem:[%s2635_s7 + $0xf0] sm:$0xf0] }
  0x3e   : > { %v2037_v2 = vld [vmem:[%s2635_s7 + $0x340] sm:$0xf]  ;;  %v2251_v3 = vld [vmem:[%s2635_s7 + $0x34c] sm:$0xf0]  ;;  %v1910_v6 = vor.u32 %v2219_v1, %v1909_v0  ;;  %1083 = vmatpush.bf16.msra.mxu0 %v1654_v4  ;;  %v2269_v47 = vld [vmem:[%s2635_s7 + $0x3e4] sm:$0xf]  ;;  %v1738_v58 = vor.u32 %v2173_v45, %v1735_v46 }
  0x3f   : > { %v1637_v7 = vld [vmem:[%s2635_s7 + $0x20] sm:$0xf]  ;;  %v2151_v8 = vld [vmem:[%s2635_s7 + $0x2c] sm:$0xf0]  ;;  %v2038_v10 = vor.u32 %v2251_v3, %v2037_v2  ;;  %1102 = vmatpush.bf16.msra.mxu1 %v1782_v5  ;;  %v2119_v50 = vld [vmem:[%s2635_s7 + $0x3f0] sm:$0xf0] }
  0x40   : > { %v1765_v9 = vld [vmem:[%s2635_s7 + $0x120] sm:$0xf]  ;;  %v2183_v11 = vld [vmem:[%s2635_s7 + $0x12c] sm:$0xf0]  ;;  %v1638_v17 = vor.u32 %v2151_v8, %v1637_v7  ;;  %1121 = vmatpush.bf16.msra.mxu2 %v1910_v6  ;;  %v2233_v51 = vld [vmem:[%s2635_s7 + $0x2c4] sm:$0xf]  ;;  %v2122_v59 = vor.u32 %v2269_v47, %v2119_v50 }
  0x41   : > { %v1893_v12 = vld [vmem:[%s2635_s7 + $0x220] sm:$0xf]  ;;  %v2215_v13 = vld [vmem:[%s2635_s7 + $0x22c] sm:$0xf0]  ;;  %v1766_v21 = vor.u32 %v2183_v11, %v1765_v9  ;;  %1140 = vmatpush.bf16.msra.mxu3 %v2038_v10  ;;  %v1975_v52 = vld [vmem:[%s2635_s7 + $0x2d0] sm:$0xf0] }
  0x42   : > { %v2021_v14 = vld [vmem:[%s2635_s7 + $0x320] sm:$0xf]  ;;  %v2247_v15 = vld [vmem:[%s2635_s7 + $0x32c] sm:$0xf0]  ;;  %v1894_v22 = vor.u32 %v2215_v13, %v1893_v12  ;;  %1084 = vmatpush.bf16.msra.mxu0 %v1638_v17  ;;  %v2201_v55 = vld [vmem:[%s2635_s7 + $0x1c4] sm:$0xf]  ;;  %v1978_v60 = vor.u32 %v2233_v51, %v1975_v52 }
  0x43   : > { %v1621_v16 = vld [vmem:[%s2635_s7] sm:$0xf]  ;;  %v2147_v18 = vld [vmem:[%s2635_s7 + $0xc] sm:$0xf0]  ;;  %v2022_v26 = vor.u32 %v2247_v15, %v2021_v14  ;;  %1103 = vmatpush.bf16.msra.mxu1 %v1766_v21  ;;  %v1847_v56 = vld [vmem:[%s2635_s7 + $0x1d0] sm:$0xf0] }
  0x44   : > { %v1749_v19 = vld [vmem:[%s2635_s7 + $0x100] sm:$0xf]  ;;  %v2179_v20 = vld [vmem:[%s2635_s7 + $0x10c] sm:$0xf0]  ;;  %v1622_v34 = vor.u32 %v2147_v18, %v1621_v16  ;;  %1122 = vmatpush.bf16.msra.mxu2 %v1894_v22  ;;  %v2169_v61 = vld [vmem:[%s2635_s7 + $0xc4] sm:$0xf]  ;;  %v1850_v0 = vor.u32 %v2201_v55, %v1847_v56 }
  0x45   : > { %v1877_v23 = vld [vmem:[%s2635_s7 + $0x200] sm:$0xf]  ;;  %v2211_v24 = vld [vmem:[%s2635_s7 + $0x20c] sm:$0xf0]  ;;  %v1750_v38 = vor.u32 %v2179_v20, %v1749_v19  ;;  %1141 = vmatpush.bf16.msra.mxu3 %v2022_v26  ;;  %v1719_v62 = vld [vmem:[%s2635_s7 + $0xd0] sm:$0xf0] }
  0x46   : > { %v2005_v25 = vld [vmem:[%s2635_s7 + $0x300] sm:$0xf]  ;;  %v2243_v27 = vld [vmem:[%s2635_s7 + $0x30c] sm:$0xf0]  ;;  %v1878_v39 = vor.u32 %v2211_v24, %v1877_v23  ;;  %1085 = vmatpush.bf16.msra.mxu0 %v1622_v34  ;;  %v2265_v63 = vld [vmem:[%s2635_s7 + $0x3c4] sm:$0xf]  ;;  %v1722_v6 = vor.u32 %v2169_v61, %v1719_v62 }
  0x47   : > { %v1589_v28 = vld [vmem:[#allocation3] sm:$0xf]  ;;  %v2139_v29 = vld [vmem:[#allocation3 + $0xc] sm:$0xf0]  ;;  %v2006_v43 = vor.u32 %v2243_v27, %v2005_v25  ;;  %1104 = vmatpush.bf16.msra.mxu1 %v1750_v38  ;;  %v2103_v1 = vld [vmem:[%s2635_s7 + $0x3d0] sm:$0xf0] }
  0x48   : > { %v2712_v48 = vor.u32 %v2139_v29, %v1589_v28  ;;  %1123 = vmatpush.bf16.msra.mxu2 %v1878_v39  ;;  %v2229_v2 = vld [vmem:[%s2635_s7 + $0x2a4] sm:$0xf]  ;;  %v1959_v3 = vld [vmem:[%s2635_s7 + $0x2b0] sm:$0xf0]  ;;  %v2106_v7 = vor.u32 %v2265_v63, %v2103_v1  ;;  %v1605_v25 = vld [vmem:[#allocation3 + $0x20] sm:$0xf] }
  0x49   : > { %1142 = vmatpush.bf16.msra.mxu3 %v2006_v43  ;;  %v2197_v4 = vld [vmem:[%s2635_s7 + $0x1a4] sm:$0xf]  ;;  %v1831_v5 = vld [vmem:[%s2635_s7 + $0x1b0] sm:$0xf0]  ;;  %v1962_v8 = vor.u32 %v2229_v2, %v1959_v3  ;;  %v2143_v26 = vld [vmem:[#allocation3 + $0x2c] sm:$0xf0] }
  0x4a   : > { %1086 = vmatmul.bf16.vlgmr.msra.gmra.mxu0 %v2712_v48  ;;  %1105 = vmatmul.bf16.vlgmr.msra.gmra.mxu1 %v2717_v53  ;;  %v2165_v9 = vld [vmem:[%s2635_s7 + $0xa4] sm:$0xf]  ;;  %v1703_v10 = vld [vmem:[%s2635_s7 + $0xb0] sm:$0xf0]  ;;  %v1834_v12 = vor.u32 %v2197_v4, %v1831_v5  ;;  %v1613_v32 = vld [vmem:[#allocation3 + $0x28] sm:$0xf] }
  0x4b   : > { %1173 = vmatpush.bf16.msrb.mxu1 %v1866_v49  ;;  %1124 = vmatmul.bf16.vlgmr.msra.gmra.mxu2 %v2719_v54  ;;  %v2261_v11 = vld [vmem:[%s2635_s7 + $0x3a4] sm:$0xf]  ;;  %v2087_v13 = vld [vmem:[%s2635_s7 + $0x3b0] sm:$0xf0]  ;;  %v1706_v18 = vor.u32 %v2165_v9, %v1703_v10  ;;  %v2144_v36 = vld [vmem:[#allocation3 + $0x34] sm:$0xf0] }
  0x4c   : > { %1192 = vmatpush.bf16.msrb.mxu2 %v1994_v44  ;;  %1143 = vmatmul.bf16.vlgmr.msra.gmra.mxu3 %v2723_v57  ;;  %v2225_v14 = vld [vmem:[%s2635_s7 + $0x284] sm:$0xf]  ;;  %v1943_v15 = vld [vmem:[%s2635_s7 + $0x290] sm:$0xf0]  ;;  %v2090_v22 = vor.u32 %v2261_v11, %v2087_v13  ;;  %v2142_v37 = vld [vmem:[#allocation3 + $0x2c] sm:$0xf]  ;;  %v2756_v44 = vor.u32 %v2143_v26, %v1605_v25  ;;  %v2763_v51 = vor.u32 %v2144_v36, %v1613_v32 }
  0x4d   : > { %1154 = vmatpush.bf16.msrb.mxu0 %v1738_v58  ;;  %1211 = vmatpush.bf16.msrb.mxu3 %v2122_v59  ;;  %v2193_v16 = vld [vmem:[%s2635_s7 + $0x184] sm:$0xf]  ;;  %v1815_v17 = vld [vmem:[%s2635_s7 + $0x190] sm:$0xf0]  ;;  %v1946_v23 = vor.u32 %v2225_v14, %v1943_v15  ;;  %v1615_v38 = vld [vmem:[#allocation3 + $0x38] sm:$0xf0] }
  0x4e   : > { %v2161_v19 = vld [vmem:[%s2635_s7 + $0x84] sm:$0xf]  ;;  %v1687_v20 = vld [vmem:[%s2635_s7 + $0x90] sm:$0xf0]  ;;  %v1818_v27 = vor.u32 %v2193_v16, %v1815_v17  ;;  %v2767_v56 = vor.u32 %v2142_v37, %v1615_v38  ;;  %v2176_v32 = vld [vmem:[%s2635_s7 + $0xf4] sm:$0xf0] }
  0x4f   : > { %1174 = vmatpush.bf16.msrb.mxu1 %v1850_v0  ;;  %v2257_v21 = vld [vmem:[%s2635_s7 + $0x384] sm:$0xf]  ;;  %v2071_v24 = vld [vmem:[%s2635_s7 + $0x390] sm:$0xf0]  ;;  %v1690_v35 = vor.u32 %v2161_v19, %v1687_v20  ;;  %v2240_v19 = vld [vmem:[%s2635_s7 + $0x2f4] sm:$0xf0] }
  0x50   : > { %1193 = vmatpush.bf16.msrb.mxu2 %v1978_v60  ;;  %v2141_v28 = vld [vmem:[#allocation3 + $0x24] sm:$0xf]  ;;  %v1607_v29 = vld [vmem:[#allocation3 + $0x30] sm:$0xf0]  ;;  %v2074_v39 = vor.u32 %v2257_v21, %v2071_v24  ;;  %v1981_v36 = vld [vmem:[%s2635_s7 + $0x2c8] sm:$0xf] }
  0x51   : > { %1155 = vmatpush.bf16.msrb.mxu0 %v1722_v6  ;;  %1212 = vmatpush.bf16.msrb.mxu3 %v2106_v7  ;;  %v2221_v30 = vld [vmem:[%s2635_s7 + $0x264] sm:$0xf]  ;;  %v1927_v31 = vld [vmem:[%s2635_s7 + $0x270] sm:$0xf0]  ;;  %v2761_v50 = vor.u32 %v2141_v28, %v1607_v29  ;;  %v2236_v37 = vld [vmem:[%s2635_s7 + $0x2d4] sm:$0xf0] }
  0x52   : > { %v2189_v33 = vld [vmem:[%s2635_s7 + $0x164] sm:$0xf]  ;;  %v1799_v34 = vld [vmem:[%s2635_s7 + $0x170] sm:$0xf0]  ;;  %v1930_v40 = vor.u32 %v2221_v30, %v1927_v31  ;;  %v1741_v31 = vld [vmem:[%s2635_s7 + $0xe8] sm:$0xf] }
  0x53   : > { %1175 = vmatpush.bf16.msrb.mxu1 %v1834_v12  ;;  %v2157_v41 = vld [vmem:[%s2635_s7 + $0x64] sm:$0xf]  ;;  %v1671_v42 = vld [vmem:[%s2635_s7 + $0x70] sm:$0xf0]  ;;  %v1802_v45 = vor.u32 %v2189_v33, %v1799_v34  ;;  %v2125_v33 = vld [vmem:[%s2635_s7 + $0x3e8] sm:$0xf] }
  0x54   : > { %1194 = vmatpush.bf16.msrb.mxu2 %v1962_v8  ;;  %v2253_v43 = vld [vmem:[%s2635_s7 + $0x364] sm:$0xf]  ;;  %v2055_v46 = vld [vmem:[%s2635_s7 + $0x370] sm:$0xf0]  ;;  %v1674_v58 = vor.u32 %v2157_v41, %v1671_v42  ;;  %v1725_v41 = vld [vmem:[%s2635_s7 + $0xc8] sm:$0xf] }
  0x55   : > { %1156 = vmatpush.bf16.msrb.mxu0 %v1706_v18  ;;  %1213 = vmatpush.bf16.msrb.mxu3 %v2090_v22  ;;  %v2217_v47 = vld [vmem:[%s2635_s7 + $0x244] sm:$0xf]  ;;  %v1911_v49 = vld [vmem:[%s2635_s7 + $0x250] sm:$0xf0]  ;;  %v2058_v59 = vor.u32 %v2253_v43, %v2055_v46  ;;  %v1997_v18 = vld [vmem:[%s2635_s7 + $0x2e8] sm:$0xf] }
  0x56   : > { %v2185_v52 = vld [vmem:[%s2635_s7 + $0x144] sm:$0xf]  ;;  %v1783_v55 = vld [vmem:[%s2635_s7 + $0x150] sm:$0xf0]  ;;  %v1914_v60 = vor.u32 %v2217_v47, %v1911_v49  ;;  %v1869_v22 = vld [vmem:[%s2635_s7 + $0x1e8] sm:$0xf]  ;;  %v1998_v30 = vor.u32 %v2240_v19, %v1997_v18 }
  0x57   : > { %1176 = vmatpush.bf16.msrb.mxu1 %v1818_v27  ;;  %v2153_v61 = vld [vmem:[%s2635_s7 + $0x44] sm:$0xf]  ;;  %v1655_v62 = vld [vmem:[%s2635_s7 + $0x50] sm:$0xf0]  ;;  %v1786_v0 = vor.u32 %v2185_v52, %v1783_v55  ;;  %v2172_v42 = vld [vmem:[%s2635_s7 + $0xd4] sm:$0xf0] }
  0x58   : > { %1195 = vmatpush.bf16.msrb.mxu2 %v1946_v23  ;;  %v2249_v63 = vld [vmem:[%s2635_s7 + $0x344] sm:$0xf]  ;;  %v2039_v1 = vld [vmem:[%s2635_s7 + $0x350] sm:$0xf0]  ;;  %v1658_v6 = vor.u32 %v2153_v61, %v1655_v62  ;;  %v2208_v23 = vld [vmem:[%s2635_s7 + $0x1f4] sm:$0xf0] }
  0x59   : > { %1157 = vmatpush.bf16.msrb.mxu0 %v1690_v35  ;;  %1214 = vmatpush.bf16.msrb.mxu3 %v2074_v39  ;;  %v2213_v2 = vld [vmem:[%s2635_s7 + $0x224] sm:$0xf]  ;;  %v1895_v3 = vld [vmem:[%s2635_s7 + $0x230] sm:$0xf0]  ;;  %v2042_v8 = vor.u32 %v2249_v63, %v2039_v1  ;;  %v1870_v34 = vor.u32 %v2208_v23, %v1869_v22  ;;  %v2272_v35 = vld [vmem:[%s2635_s7 + $0x3f4] sm:$0xf0] }
  0x5a   : > { %1091 = vmatmul.bf16.gmra.mxu0 %v2756_v44  ;;  %1110 = vmatmul.bf16.gmra.mxu1 %v2761_v50  ;;  %v2181_v4 = vld [vmem:[%s2635_s7 + $0x124] sm:$0xf]  ;;  %v1767_v5 = vld [vmem:[%s2635_s7 + $0x130] sm:$0xf0]  ;;  %v1898_v9 = vor.u32 %v2213_v2, %v1895_v3  ;;  %v2126_v43 = vor.u32 %v2272_v35, %v2125_v33  ;;  %v1853_v46 = vld [vmem:[%s2635_s7 + $0x1c8] sm:$0xf] }
  0x5b   : > { %1177 = vmatpush.bf16.msrb.mxu1 %v1802_v45  ;;  %1129 = vmatmul.bf16.gmra.mxu2 %v2763_v51  ;;  %v2149_v7 = vld [vmem:[%s2635_s7 + $0x24] sm:$0xf]  ;;  %v1639_v10 = vld [vmem:[%s2635_s7 + $0x30] sm:$0xf0]  ;;  %v1770_v13 = vor.u32 %v2181_v4, %v1767_v5  ;;  %v1982_v45 = vor.u32 %v2236_v37, %v1981_v36  ;;  %v2204_v47 = vld [vmem:[%s2635_s7 + $0x1d4] sm:$0xf0] }
  0x5c   : > { %1196 = vmatpush.bf16.msrb.mxu2 %v1930_v40  ;;  %1148 = vmatmul.bf16.gmra.mxu3 %v2767_v56  ;;  %v2245_v11 = vld [vmem:[%s2635_s7 + $0x324] sm:$0xf]  ;;  %v2023_v12 = vld [vmem:[%s2635_s7 + $0x330] sm:$0xf0]  ;;  %v1642_v20 = vor.u32 %v2149_v7, %v1639_v10  ;;  %v1742_v40 = vor.u32 %v2176_v32, %v1741_v31  ;;  %v2109_v49 = vld [vmem:[%s2635_s7 + $0x3c8] sm:$0xf] }
  0x5d   : > { %1158 = vmatpush.bf16.msrb.mxu0 %v1674_v58  ;;  %1215 = vmatpush.bf16.msrb.mxu3 %v2058_v59  ;;  %v2209_v14 = vld [vmem:[%s2635_s7 + $0x204] sm:$0xf]  ;;  %v1879_v15 = vld [vmem:[%s2635_s7 + $0x210] sm:$0xf0]  ;;  %v2026_v24 = vor.u32 %v2245_v11, %v2023_v12  ;;  %v2268_v52 = vld [vmem:[%s2635_s7 + $0x3d4] sm:$0xf0]  ;;  %v1726_v59 = vor.u32 %v2172_v42, %v1725_v41 }
  0x5e   : > { %v2177_v16 = vld [vmem:[%s2635_s7 + $0x104] sm:$0xf]  ;;  %v1751_v17 = vld [vmem:[%s2635_s7 + $0x110] sm:$0xf0]  ;;  %v1882_v25 = vor.u32 %v2209_v14, %v1879_v15  ;;  %v1965_v55 = vld [vmem:[%s2635_s7 + $0x2a8] sm:$0xf]  ;;  %v2110_v63 = vor.u32 %v2268_v52, %v2109_v49 }
  0x5f   : > { %1178 = vmatpush.bf16.msrb.mxu1 %v1786_v0  ;;  %v2145_v21 = vld [vmem:[%s2635_s7 + $0x4] sm:$0xf]  ;;  %v1623_v26 = vld [vmem:[%s2635_s7 + $0x10] sm:$0xf0]  ;;  %v1754_v29 = vor.u32 %v2177_v16, %v1751_v17  ;;  %v2232_v58 = vld [vmem:[%s2635_s7 + $0x2b4] sm:$0xf0] }
  0x60   : > { %1197 = vmatpush.bf16.msrb.mxu2 %v1914_v60  ;;  %v2241_v27 = vld [vmem:[%s2635_s7 + $0x304] sm:$0xf]  ;;  %v2007_v28 = vld [vmem:[%s2635_s7 + $0x310] sm:$0xf0]  ;;  %v1626_v38 = vor.u32 %v2145_v21, %v1623_v26  ;;  %v1854_v60 = vor.u32 %v2204_v47, %v1853_v46  ;;  %v1709_v61 = vld [vmem:[%s2635_s7 + $0xa8] sm:$0xf]  ;;  %v1966_v0 = vor.u32 %v2232_v58, %v1965_v55 }
  0x61   : > { %1159 = vmatpush.bf16.msrb.mxu0 %v1658_v6  ;;  %1216 = vmatpush.bf16.msrb.mxu3 %v2042_v8  ;;  %v2010_v39 = vor.u32 %v2241_v27, %v2007_v28  ;;  %v2168_v62 = vld [vmem:[%s2635_s7 + $0xb4] sm:$0xf0]  ;;  %v1837_v1 = vld [vmem:[%s2635_s7 + $0x1a8] sm:$0xf] }
  0x62   : > { %v2200_v2 = vld [vmem:[%s2635_s7 + $0x1b4] sm:$0xf0]  ;;  %v2093_v3 = vld [vmem:[%s2635_s7 + $0x3a8] sm:$0xf]  ;;  %v1710_v7 = vor.u32 %v2168_v62, %v1709_v61 }
  0x63   : > { %1179 = vmatpush.bf16.msrb.mxu1 %v1770_v13  ;;  %v2264_v4 = vld [vmem:[%s2635_s7 + $0x3b4] sm:$0xf0]  ;;  %v1949_v5 = vld [vmem:[%s2635_s7 + $0x288] sm:$0xf]  ;;  %v1838_v8 = vor.u32 %v2200_v2, %v1837_v1 }
  0x64   : > { %1198 = vmatpush.bf16.msrb.mxu2 %v1898_v9  ;;  %v2228_v6 = vld [vmem:[%s2635_s7 + $0x294] sm:$0xf0]  ;;  %v1693_v9 = vld [vmem:[%s2635_s7 + $0x88] sm:$0xf]  ;;  %v2094_v11 = vor.u32 %v2264_v4, %v2093_v3 }
  0x65   : > { %1160 = vmatpush.bf16.msrb.mxu0 %v1642_v20  ;;  %1217 = vmatpush.bf16.msrb.mxu3 %v2026_v24  ;;  %v2164_v10 = vld [vmem:[%s2635_s7 + $0x94] sm:$0xf0]  ;;  %v1950_v12 = vor.u32 %v2228_v6, %v1949_v5  ;;  %v1821_v13 = vld [vmem:[%s2635_s7 + $0x188] sm:$0xf] }
  0x66   : > { %v2196_v14 = vld [vmem:[%s2635_s7 + $0x194] sm:$0xf0]  ;;  %v2077_v15 = vld [vmem:[%s2635_s7 + $0x388] sm:$0xf]  ;;  %v1694_v19 = vor.u32 %v2164_v10, %v1693_v9 }
  0x67   : > { %1180 = vmatpush.bf16.msrb.mxu1 %v1754_v29  ;;  %v2260_v16 = vld [vmem:[%s2635_s7 + $0x394] sm:$0xf0]  ;;  %v1933_v17 = vld [vmem:[%s2635_s7 + $0x268] sm:$0xf]  ;;  %v1822_v20 = vor.u32 %v2196_v14, %v1821_v13  ;;  %v1743_v13 = vld [vmem:[%s2635_s7 + $0xf8] sm:$0xf0] }
  0x68   : > { %1199 = vmatpush.bf16.msrb.mxu2 %v1882_v25  ;;  %v2224_v18 = vld [vmem:[%s2635_s7 + $0x274] sm:$0xf0]  ;;  %v1677_v21 = vld [vmem:[%s2635_s7 + $0x68] sm:$0xf]  ;;  %v2078_v23 = vor.u32 %v2260_v16, %v2077_v15  ;;  %v2206_v14 = vld [vmem:[%s2635_s7 + $0x1ec] sm:$0xf] }
  0x69   : > { %1161 = vmatpush.bf16.msrb.mxu0 %v1626_v38  ;;  %1218 = vmatpush.bf16.msrb.mxu3 %v2010_v39  ;;  %v2160_v22 = vld [vmem:[%s2635_s7 + $0x74] sm:$0xf0]  ;;  %v1934_v24 = vor.u32 %v2224_v18, %v1933_v17  ;;  %v1805_v25 = vld [vmem:[%s2635_s7 + $0x168] sm:$0xf]  ;;  %v1871_v15 = vld [vmem:[%s2635_s7 + $0x1f8] sm:$0xf0] }
  0x6a   : > { %1181 = vmatmul.bf16.vlgmr.msrb.gmra.mxu1 %v2717_v53  ;;  %v2192_v26 = vld [vmem:[%s2635_s7 + $0x174] sm:$0xf0]  ;;  %v2061_v27 = vld [vmem:[%s2635_s7 + $0x368] sm:$0xf]  ;;  %v1678_v31 = vor.u32 %v2160_v22, %v1677_v21  ;;  %v2270_v16 = vld [vmem:[%s2635_s7 + $0x3ec] sm:$0xf] }
  0x6b   : > { %1249 = vmatpush.bf16.msra.mxu1 %v1870_v34  ;;  %1200 = vmatmul.bf16.vlgmr.msrb.gmra.mxu2 %v2719_v54  ;;  %v2256_v28 = vld [vmem:[%s2635_s7 + $0x374] sm:$0xf0]  ;;  %v1917_v29 = vld [vmem:[%s2635_s7 + $0x248] sm:$0xf]  ;;  %v1806_v32 = vor.u32 %v2192_v26, %v1805_v25  ;;  %v2127_v17 = vld [vmem:[%s2635_s7 + $0x3f8] sm:$0xf0] }
  0x6c   : > { %1268 = vmatpush.bf16.msra.mxu2 %v1998_v30  ;;  %1162 = vmatmul.bf16.vlgmr.msrb.gmra.mxu0 %v2712_v48  ;;  %v2220_v30 = vld [vmem:[%s2635_s7 + $0x254] sm:$0xf0]  ;;  %v1661_v33 = vld [vmem:[%s2635_s7 + $0x48] sm:$0xf]  ;;  %v2062_v35 = vor.u32 %v2256_v28, %v2061_v27  ;;  %v1983_v21 = vld [vmem:[%s2635_s7 + $0x2d8] sm:$0xf0]  ;;  %v2130_v25 = vor.u32 %v2270_v16, %v2127_v17 }
  0x6d   : > { %1230 = vmatpush.bf16.msra.mxu0 %v1742_v40  ;;  %1287 = vmatpush.bf16.msra.mxu3 %v2126_v43  ;;  %v2156_v34 = vld [vmem:[%s2635_s7 + $0x54] sm:$0xf0]  ;;  %v1918_v36 = vor.u32 %v2220_v30, %v1917_v29  ;;  %v1789_v37 = vld [vmem:[%s2635_s7 + $0x148] sm:$0xf]  ;;  %v2170_v26 = vld [vmem:[%s2635_s7 + $0xcc] sm:$0xf] }
  0x6e   : > { %1219 = vmatmul.bf16.vlgmr.msrb.gmra.mxu3 %v2723_v57  ;;  %v2188_v38 = vld [vmem:[%s2635_s7 + $0x154] sm:$0xf0]  ;;  %v2045_v39 = vld [vmem:[%s2635_s7 + $0x348] sm:$0xf]  ;;  %v1662_v43 = vor.u32 %v2156_v34, %v1661_v33  ;;  %v1727_v27 = vld [vmem:[%s2635_s7 + $0xd8] sm:$0xf0] }
  0x6f   : > { %1250 = vmatpush.bf16.msra.mxu1 %v1854_v60  ;;  %v2252_v40 = vld [vmem:[%s2635_s7 + $0x354] sm:$0xf0]  ;;  %v1901_v41 = vld [vmem:[%s2635_s7 + $0x228] sm:$0xf]  ;;  %v2202_v29 = vld [vmem:[%s2635_s7 + $0x1cc] sm:$0xf] }
  0x70   : > { %1269 = vmatpush.bf16.msra.mxu2 %v1982_v45  ;;  %v2216_v42 = vld [vmem:[%s2635_s7 + $0x234] sm:$0xf0]  ;;  %v1790_v45 = vor.u32 %v2188_v38, %v1789_v37  ;;  %v1645_v46 = vld [vmem:[%s2635_s7 + $0x28] sm:$0xf]  ;;  %v2046_v49 = vor.u32 %v2252_v40, %v2045_v39  ;;  %v1855_v30 = vld [vmem:[%s2635_s7 + $0x1d8] sm:$0xf0] }
  0x71   : > { %1231 = vmatpush.bf16.msra.mxu0 %v1726_v59  ;;  %1288 = vmatpush.bf16.msra.mxu3 %v2110_v63  ;;  %v2152_v47 = vld [vmem:[%s2635_s7 + $0x34] sm:$0xf0]  ;;  %v1902_v52 = vor.u32 %v2216_v42, %v1901_v41  ;;  %v1773_v55 = vld [vmem:[%s2635_s7 + $0x128] sm:$0xf]  ;;  %v2238_v63 = vld [vmem:[%s2635_s7 + $0x2ec] sm:$0xf]  ;;  %v1858_v38 = vor.u32 %v2202_v29, %v1855_v30 }
  0x72   : > { %v2184_v58 = vld [vmem:[%s2635_s7 + $0x134] sm:$0xf0]  ;;  %v2029_v59 = vld [vmem:[%s2635_s7 + $0x328] sm:$0xf]  ;;  %v1646_v1 = vor.u32 %v2152_v47, %v1645_v46  ;;  %v2111_v33 = vld [vmem:[%s2635_s7 + $0x3d8] sm:$0xf0] }
  0x73   : > { %1251 = vmatpush.bf16.msra.mxu1 %v1838_v8  ;;  %v2248_v60 = vld [vmem:[%s2635_s7 + $0x334] sm:$0xf0]  ;;  %v1885_v61 = vld [vmem:[%s2635_s7 + $0x208] sm:$0xf]  ;;  %v1774_v2 = vor.u32 %v2184_v58, %v1773_v55  ;;  %v2230_v34 = vld [vmem:[%s2635_s7 + $0x2ac] sm:$0xf] }
  0x74   : > { %1270 = vmatpush.bf16.msra.mxu2 %v1966_v0  ;;  %v2212_v62 = vld [vmem:[%s2635_s7 + $0x214] sm:$0xf0]  ;;  %v1999_v0 = vld [vmem:[%s2635_s7 + $0x2f8] sm:$0xf0]  ;;  %v1629_v3 = vld [vmem:[%s2635_s7 + $0x8] sm:$0xf]  ;;  %v2030_v6 = vor.u32 %v2248_v60, %v2029_v59 }
  0x75   : > { %1232 = vmatpush.bf16.msra.mxu0 %v1710_v7  ;;  %1289 = vmatpush.bf16.msra.mxu3 %v2094_v11  ;;  %v2148_v4 = vld [vmem:[%s2635_s7 + $0x14] sm:$0xf0]  ;;  %v1757_v5 = vld [vmem:[%s2635_s7 + $0x108] sm:$0xf]  ;;  %v1886_v7 = vor.u32 %v2212_v62, %v1885_v61  ;;  %v2002_v11 = vor.u32 %v2238_v63, %v1999_v0  ;;  %v1711_v37 = vld [vmem:[%s2635_s7 + $0xb8] sm:$0xf0] }
  0x76   : > { %v2180_v8 = vld [vmem:[%s2635_s7 + $0x114] sm:$0xf0]  ;;  %v2013_v9 = vld [vmem:[%s2635_s7 + $0x308] sm:$0xf]  ;;  %v1630_v18 = vor.u32 %v2148_v4, %v1629_v3  ;;  %v2198_v40 = vld [vmem:[%s2635_s7 + $0x1ac] sm:$0xf] }
  0x77   : > { %1252 = vmatpush.bf16.msra.mxu1 %v1822_v20  ;;  %v2244_v10 = vld [vmem:[%s2635_s7 + $0x314] sm:$0xf0]  ;;  %v2234_v20 = vld [vmem:[%s2635_s7 + $0x2cc] sm:$0xf]  ;;  %v1839_v41 = vld [vmem:[%s2635_s7 + $0x1b8] sm:$0xf0] }
  0x78   : > { %1271 = vmatpush.bf16.msra.mxu2 %v1950_v12  ;;  %v2174_v12 = vld [vmem:[%s2635_s7 + $0xec] sm:$0xf]  ;;  %v2014_v22 = vor.u32 %v2244_v10, %v2013_v9  ;;  %v1986_v28 = vor.u32 %v2234_v20, %v1983_v21  ;;  %v2095_v46 = vld [vmem:[%s2635_s7 + $0x3b8] sm:$0xf0]  ;;  %v1842_v58 = vor.u32 %v2198_v40, %v1839_v41 }
  0x79   : > { %1233 = vmatpush.bf16.msra.mxu0 %v1694_v19  ;;  %1290 = vmatpush.bf16.msra.mxu3 %v2078_v23  ;;  %v1758_v19 = vor.u32 %v2180_v8, %v1757_v5  ;;  %v1746_v23 = vor.u32 %v2174_v12, %v1743_v13  ;;  %v2226_v47 = vld [vmem:[%s2635_s7 + $0x28c] sm:$0xf]  ;;  %v1695_v55 = vld [vmem:[%s2635_s7 + $0x98] sm:$0xf0] }
  0x7a   : > { %1186 = vmatmul.bf16.gmra.mxu1 %v2761_v50  ;;  %v2194_v60 = vld [vmem:[%s2635_s7 + $0x18c] sm:$0xf]  ;;  %v1823_v61 = vld [vmem:[%s2635_s7 + $0x198] sm:$0xf0] }
  0x7b   : > { %1253 = vmatpush.bf16.msra.mxu1 %v1806_v32  ;;  %1205 = vmatmul.bf16.gmra.mxu2 %v2763_v51  ;;  %v2266_v32 = vld [vmem:[%s2635_s7 + $0x3cc] sm:$0xf]  ;;  %v1935_v3 = vld [vmem:[%s2635_s7 + $0x278] sm:$0xf0] }
  0x7c   : > { %1272 = vmatpush.bf16.msra.mxu2 %v1934_v24  ;;  %1167 = vmatmul.bf16.gmra.mxu0 %v2756_v44  ;;  %v1874_v24 = vor.u32 %v2206_v14, %v1871_v15  ;;  %v2114_v39 = vor.u32 %v2266_v32, %v2111_v33  ;;  %v2258_v0 = vld [vmem:[%s2635_s7 + $0x38c] sm:$0xf]  ;;  %v1679_v5 = vld [vmem:[%s2635_s7 + $0x78] sm:$0xf0] }
  0x7d   : > { %1234 = vmatpush.bf16.msra.mxu0 %v1678_v31  ;;  %1291 = vmatpush.bf16.msra.mxu3 %v2062_v35  ;;  %v1730_v31 = vor.u32 %v2170_v26, %v1727_v27  ;;  %v1967_v35 = vld [vmem:[%s2635_s7 + $0x2b8] sm:$0xf0]  ;;  %v2158_v4 = vld [vmem:[%s2635_s7 + $0x6c] sm:$0xf] }
  0x7e   : > { %1224 = vmatmul.bf16.gmra.mxu3 %v2767_v56  ;;  %v1970_v42 = vor.u32 %v2230_v34, %v1967_v35  ;;  %v2190_v8 = vld [vmem:[%s2635_s7 + $0x16c] sm:$0xf]  ;;  %v1807_v9 = vld [vmem:[%s2635_s7 + $0x178] sm:$0xf0] }
  0x7f   : > { %1254 = vmatpush.bf16.msra.mxu1 %v1790_v45  ;;  %v2262_v45 = vld [vmem:[%s2635_s7 + $0x3ac] sm:$0xf]  ;;  %v2063_v13 = vld [vmem:[%s2635_s7 + $0x378] sm:$0xf0] }
  0x80   : > { %1273 = vmatpush.bf16.msra.mxu2 %v1918_v36  ;;  %v2166_v36 = vld [vmem:[%s2635_s7 + $0xac] sm:$0xf]  ;;  %v2098_v59 = vor.u32 %v2262_v45, %v2095_v46  ;;  %v1919_v15 = vld [vmem:[%s2635_s7 + $0x258] sm:$0xf0] }
  0x81   : > { %1235 = vmatpush.bf16.msra.mxu0 %v1662_v43  ;;  %1292 = vmatpush.bf16.msra.mxu3 %v2046_v49  ;;  %v1714_v43 = vor.u32 %v2166_v36, %v1711_v37  ;;  %v1951_v49 = vld [vmem:[%s2635_s7 + $0x298] sm:$0xf0]  ;;  %v2254_v12 = vld [vmem:[%s2635_s7 + $0x36c] sm:$0xf] }
  0x82   : > { %v1954_v62 = vor.u32 %v2226_v47, %v1951_v49  ;;  %v2218_v14 = vld [vmem:[%s2635_s7 + $0x24c] sm:$0xf]  ;;  %v1663_v17 = vld [vmem:[%s2635_s7 + $0x58] sm:$0xf0] }
  0x83   : > { %1255 = vmatpush.bf16.msra.mxu1 %v1774_v2  ;;  %v2222_v2 = vld [vmem:[%s2635_s7 + $0x26c] sm:$0xf]  ;;  %v1791_v21 = vld [vmem:[%s2635_s7 + $0x158] sm:$0xf0] }
  0x84   : > { %1274 = vmatpush.bf16.msra.mxu2 %v1902_v52  ;;  %v2162_v52 = vld [vmem:[%s2635_s7 + $0x8c] sm:$0xf]  ;;  %v1938_v10 = vor.u32 %v2222_v2, %v1935_v3  ;;  %v1903_v27 = vld [vmem:[%s2635_s7 + $0x238] sm:$0xf0] }
  0x85   : > { %1236 = vmatpush.bf16.msra.mxu0 %v1646_v1  ;;  %1293 = vmatpush.bf16.msra.mxu3 %v2030_v6  ;;  %v1698_v63 = vor.u32 %v2162_v52, %v1695_v55  ;;  %v2079_v1 = vld [vmem:[%s2635_s7 + $0x398] sm:$0xf0]  ;;  %v1826_v6 = vor.u32 %v2194_v60, %v1823_v61  ;;  %v2154_v16 = vld [vmem:[%s2635_s7 + $0x4c] sm:$0xf] }
  0x86   : > { %v2186_v20 = vld [vmem:[%s2635_s7 + $0x14c] sm:$0xf]  ;;  %v1647_v29 = vld [vmem:[%s2635_s7 + $0x38] sm:$0xf0] }
  0x87   : > { %1256 = vmatpush.bf16.msra.mxu1 %v1758_v19  ;;  %v2066_v19 = vor.u32 %v2254_v12, %v2063_v13  ;;  %v2214_v26 = vld [vmem:[%s2635_s7 + $0x22c] sm:$0xf]  ;;  %v1794_v30 = vor.u32 %v2186_v20, %v1791_v21  ;;  %v1775_v33 = vld [vmem:[%s2635_s7 + $0x138] sm:$0xf0] }
  0x88   : > { %1275 = vmatpush.bf16.msra.mxu2 %v1886_v7  ;;  %v2082_v7 = vor.u32 %v2258_v0, %v2079_v1  ;;  %v2182_v32 = vld [vmem:[%s2635_s7 + $0x12c] sm:$0xf]  ;;  %v1906_v34 = vor.u32 %v2214_v26, %v1903_v27  ;;  %v2031_v37 = vld [vmem:[%s2635_s7 + $0x338] sm:$0xf0] }
  0x89   : > { %1237 = vmatpush.bf16.msra.mxu0 %v1630_v18  ;;  %1294 = vmatpush.bf16.msra.mxu3 %v2014_v22  ;;  %v1810_v18 = vor.u32 %v2190_v8, %v1807_v9  ;;  %v1922_v22 = vor.u32 %v2218_v14, %v1919_v15  ;;  %v2246_v36 = vld [vmem:[%s2635_s7 + $0x32c] sm:$0xf]  ;;  %v1631_v41 = vld [vmem:[%s2635_s7 + $0x18] sm:$0xf0] }
  0x8a   : > { %1257 = vmatmul.bf16.vlgmr.msra.gmra.mxu1 %v2717_v53  ;;  %v2146_v40 = vld [vmem:[%s2635_s7 + $0xc] sm:$0xf]  ;;  %v1759_v49 = vld [vmem:[%s2635_s7 + $0x118] sm:$0xf0] }
  0x8b   : > { %1325 = vmatpush.bf16.msrb.mxu1 %v1874_v24  ;;  %1276 = vmatmul.bf16.vlgmr.msra.gmra.mxu2 %v2719_v54  ;;  %v2250_v24 = vld [vmem:[%s2635_s7 + $0x34c] sm:$0xf]  ;;  %v1634_v47 = vor.u32 %v2146_v40, %v1631_v41  ;;  %v2015_v55 = vld [vmem:[%s2635_s7 + $0x318] sm:$0xf0] }
  0x8c   : > { %1344 = vmatpush.bf16.msrb.mxu2 %v2002_v11  ;;  %1238 = vmatmul.bf16.vlgmr.msra.gmra.mxu0 %v2712_v48  ;;  %v1682_v11 = vor.u32 %v2158_v4, %v1679_v5  ;;  %v2178_v45 = vld [vmem:[%s2635_s7 + $0x10c] sm:$0xf] }
  0x8d   : > { %1306 = vmatpush.bf16.msrb.mxu0 %v1746_v23  ;;  %1363 = vmatpush.bf16.msrb.mxu3 %v2130_v25  ;;  %v1666_v23 = vor.u32 %v2154_v16, %v1663_v17  ;;  %v2047_v25 = vld [vmem:[%s2635_s7 + $0x358] sm:$0xf0]  ;;  %v2242_v52 = vld [vmem:[%s2635_s7 + $0x30c] sm:$0xf] }
  0x8e   : > { %1295 = vmatmul.bf16.vlgmr.msra.gmra.mxu3 %v2723_v57 }
  0x8f   : > { %1326 = vmatpush.bf16.msrb.mxu1 %v1858_v38  ;;  %v2210_v38 = vld [vmem:[%s2635_s7 + $0x20c] sm:$0xf] }
  0x90   : > { %1345 = vmatpush.bf16.msrb.mxu2 %v1986_v28  ;;  %v2150_v28 = vld [vmem:[%s2635_s7 + $0x2c] sm:$0xf] }
  0x91   : > { %1307 = vmatpush.bf16.msrb.mxu0 %v1730_v31  ;;  %1364 = vmatpush.bf16.msrb.mxu3 %v2114_v39  ;;  %v2050_v31 = vor.u32 %v2250_v24, %v2047_v25  ;;  %v1650_v35 = vor.u32 %v2150_v28, %v1647_v29  ;;  %v1887_v39 = vld [vmem:[%s2635_s7 + $0x218] sm:$0xf0] }
  0x92   : > { %v1890_v46 = vor.u32 %v2210_v38, %v1887_v39 }
  0x93   : > { %1327 = vmatpush.bf16.msrb.mxu1 %v1842_v58  ;;  %v1762_v58 = vor.u32 %v2178_v45, %v1759_v49 }
  0x94   : > { %1346 = vmatpush.bf16.msrb.mxu2 %v1970_v42  ;;  %v1778_v42 = vor.u32 %v2182_v32, %v1775_v33 }
  0x95   : > { %1308 = vmatpush.bf16.msrb.mxu0 %v1714_v43  ;;  %1365 = vmatpush.bf16.msrb.mxu3 %v2098_v59  ;;  %v2034_v43 = vor.u32 %v2246_v36, %v2031_v37  ;;  %v2018_v59 = vor.u32 %v2242_v52, %v2015_v55 }
  0x97   : > { %1328 = vmatpush.bf16.msrb.mxu1 %v1826_v6 }
  0x98   : > { %1347 = vmatpush.bf16.msrb.mxu2 %v1954_v62 }
  0x99   : > { %1309 = vmatpush.bf16.msrb.mxu0 %v1698_v63  ;;  %1366 = vmatpush.bf16.msrb.mxu3 %v2082_v7 }
  0x9a   : > { %1262 = vmatmul.bf16.gmra.mxu1 %v2761_v50 }
  0x9b   : > { %1329 = vmatpush.bf16.msrb.mxu1 %v1810_v18  ;;  %1281 = vmatmul.bf16.gmra.mxu2 %v2763_v51 }
  0x9c   : > { %1348 = vmatpush.bf16.msrb.mxu2 %v1938_v10  ;;  %1243 = vmatmul.bf16.gmra.mxu0 %v2756_v44 }
  0x9d   : > { %1310 = vmatpush.bf16.msrb.mxu0 %v1682_v11  ;;  %1367 = vmatpush.bf16.msrb.mxu3 %v2066_v19 }
  0x9e   : > { %1300 = vmatmul.bf16.gmra.mxu3 %v2767_v56 }
  0x9f   : > { %1330 = vmatpush.bf16.msrb.mxu1 %v1794_v30 }
  0xa0   : > { %1349 = vmatpush.bf16.msrb.mxu2 %v1922_v22 }
  0xa1   : > { %1311 = vmatpush.bf16.msrb.mxu0 %v1666_v23  ;;  %1368 = vmatpush.bf16.msrb.mxu3 %v2050_v31 }
  0xa3   : > { %1331 = vmatpush.bf16.msrb.mxu1 %v1778_v42 }
  0xa4   : > { %1350 = vmatpush.bf16.msrb.mxu2 %v1906_v34 }
  0xa5   : > { %1312 = vmatpush.bf16.msrb.mxu0 %v1650_v35  ;;  %1369 = vmatpush.bf16.msrb.mxu3 %v2034_v43 }
  0xa7   : > { %1332 = vmatpush.bf16.msrb.mxu1 %v1762_v58 }
  0xa8   : > { %1351 = vmatpush.bf16.msrb.mxu2 %v1890_v46 }
  0xa9   : > { %1313 = vmatpush.bf16.msrb.mxu0 %v1634_v47  ;;  %1370 = vmatpush.bf16.msrb.mxu3 %v2018_v59 }
  0xaa   : > { %1333 = vmatmul.bf16.vlgmr.msrb.gmra.mxu1 %v2717_v53 }
  0xab   : > { %1352 = vmatmul.bf16.vlgmr.msrb.gmra.mxu2 %v2719_v54 }
  0xac   : > { %1314 = vmatmul.bf16.vlgmr.msrb.gmra.mxu0 %v2712_v48 }
  0xae   : > { %1371 = vmatmul.bf16.vlgmr.msrb.gmra.mxu3 %v2723_v57 }
  0xba   : > { %1338 = vmatmul.bf16.gmra.mxu1 %v2761_v50 }
  0xbb   : > { %1357 = vmatmul.bf16.gmra.mxu2 %v2763_v51 }
  0xbc   : > { %1319 = vmatmul.bf16.gmra.mxu0 %v2756_v44 }
  0xbe   : > { %1376 = vmatmul.bf16.gmra.mxu3 %v2767_v56 }
  0xc7   : > { %v1087_v60 = vpop.f32.mrf.mxu0  ;;  %v1106_v61 = vpop.f32.mrf.mxu1 }
  0xc8   : > { %v1107_v56 = vadd.f32 %v1106_v61, %v1087_v60 }
  0xce   : > { %v1125_v62 = vpop.f32.mrf.mxu2 }
  0xcf   : > { %v1144_v63 = vpop.f32.mrf.mxu3  ;;  %v1089_v0 = vpop.f32.mrf.mxu0  ;;  %v1126_v8 = vadd.f32 %v1125_v62, %v1107_v56 }
  0xd0   : > { %v1108_v48 = vpop.f32.mrf.mxu1 }
  0xd1   : > { %v1145_v14 = vadd.f32 %v1144_v63, %v1126_v8  ;;  %v1109_v16 = vadd.f32 %v1108_v48, %v1089_v0 }
  0xd6   : > { %v1127_v1 = vpop.f32.mrf.mxu2 }
  0xd7   : > { %v1146_v53 = vpop.f32.mrf.mxu3  ;;  %v1092_v2 = vpop.f32.mrf.mxu0  ;;  %v1128_v18 = vadd.f32 %v1127_v1, %v1109_v16 }
  0xd8   : > { %v1111_v54 = vpop.f32.mrf.mxu1 }
  0xd9   : > { %v1147_v25 = vadd.f32 %v1146_v53, %v1128_v18  ;;  %v1112_v26 = vadd.f32 %v1111_v54, %v1092_v2 }
  0xde   : > { %v1130_v57 = vpop.f32.mrf.mxu2 }
  0xdf   : > { %v1149_v3 = vpop.f32.mrf.mxu3  ;;  %v1094_v44 = vpop.f32.mrf.mxu0  ;;  %v1131_v30 = vadd.f32 %v1130_v57, %v1112_v26 }
  0xe0   : > { %v1113_v4 = vpop.f32.mrf.mxu1 }
  0xe1   : > { %v1150_v36 = vadd.f32 %v1149_v3, %v1131_v30  ;;  %v1114_v38 = vadd.f32 %v1113_v4, %v1094_v44 }
  0xe6   : > { %v1132_v50 = vpop.f32.mrf.mxu2 }
  0xe7   : > { %v1151_v5 = vpop.f32.mrf.mxu3  ;;  %v1133_v40 = vadd.f32 %v1132_v50, %v1114_v38 }
  0xe8   : > { %v1182_v6 = vpop.f32.mrf.mxu1 }
  0xe9   : > { %v1163_v51 = vpop.f32.mrf.mxu0  ;;  %v1152_v49 = vadd.f32 %v1151_v5, %v1133_v40 }
  0xea   : > { %v1183_v7 = vadd.f32 %v1182_v6, %v1163_v51 }
  0xee   : > { %v1201_v9 = vpop.f32.mrf.mxu2 }
  0xef   : > { %v1202_v11 = vadd.f32 %v1201_v9, %v1183_v7 }
  0xf0   : > { %v1184_v13 = vpop.f32.mrf.mxu1 }
  0xf1   : > { %v1220_v10 = vpop.f32.mrf.mxu3  ;;  %v1165_v12 = vpop.f32.mrf.mxu0 }
  0xf2   : > { %v1221_v15 = vadd.f32 %v1220_v10, %v1202_v11  ;;  %v1185_v19 = vadd.f32 %v1184_v13, %v1165_v12 }
  0xf4   : > { %v1433_v17 = vpack.c.bf16 %v1221_v15, %v1145_v14 }
  0xf6   : > { %1441 = vst [vmem:[%s2946_s19] sm:$0xff] %v1433_v17  ;;  %v1203_v20 = vpop.f32.mrf.mxu2 }
  0xf7   : > { %v1204_v22 = vadd.f32 %v1203_v20, %v1185_v19 }
  0xf8   : > { %v1187_v24 = vpop.f32.mrf.mxu1 }
  0xf9   : > { %v1222_v21 = vpop.f32.mrf.mxu3  ;;  %v1168_v23 = vpop.f32.mrf.mxu0 }
  0xfa   : > { %v1223_v27 = vadd.f32 %v1222_v21, %v1204_v22  ;;  %v1188_v29 = vadd.f32 %v1187_v24, %v1168_v23 }
  0xfc   : > { %v1435_v28 = vpack.c.bf16 %v1223_v27, %v1147_v25 }
  0xfe   : > { %1443 = vst [vmem:[%s2946_s19 + $0x10] sm:$0xff] %v1435_v28  ;;  %v1206_v31 = vpop.f32.mrf.mxu2 }
  0xff   : > { %v1207_v33 = vadd.f32 %v1206_v31, %v1188_v29 }
 0x100   : > { %v1189_v35 = vpop.f32.mrf.mxu1 }
 0x101   : > { %v1225_v32 = vpop.f32.mrf.mxu3  ;;  %v1170_v34 = vpop.f32.mrf.mxu0 }
 0x102   : > { %v1226_v37 = vadd.f32 %v1225_v32, %v1207_v33  ;;  %v1190_v41 = vadd.f32 %v1189_v35, %v1170_v34 }
 0x104   : > { %v1437_v39 = vpack.c.bf16 %v1226_v37, %v1150_v36 }
 0x106   : > { %1445 = vst [vmem:[%s2946_s19 + $0x20] sm:$0xff] %v1437_v39  ;;  %v1208_v42 = vpop.f32.mrf.mxu2 }
 0x107   : > { %v1209_v45 = vadd.f32 %v1208_v42, %v1190_v41 }
 0x108   : > { %v1258_v47 = vpop.f32.mrf.mxu1 }
 0x109   : > { %v1227_v43 = vpop.f32.mrf.mxu3  ;;  %v1239_v46 = vpop.f32.mrf.mxu0 }
 0x10a   : > { %v1228_v52 = vadd.f32 %v1227_v43, %v1209_v45  ;;  %v1259_v50 = vadd.f32 %v1258_v47, %v1239_v46 }
 0x10c   : > { %v1439_v55 = vpack.c.bf16 %v1228_v52, %v1152_v49 }
 0x10e   : > { %1447 = vst [vmem:[%s2946_s19 + $0x30] sm:$0xff] %v1439_v55  ;;  %v1277_v58 = vpop.f32.mrf.mxu2 }
 0x10f   : > { %v1278_v51 = vadd.f32 %v1277_v58, %v1259_v50 }
 0x110   : > { %v1260_v61 = vpop.f32.mrf.mxu1 }
 0x111   : > { %v1296_v59 = vpop.f32.mrf.mxu3  ;;  %v1241_v60 = vpop.f32.mrf.mxu0 }
 0x112   : > { %v1297_v10 = vadd.f32 %v1296_v59, %v1278_v51  ;;  %v1261_v12 = vadd.f32 %v1260_v61, %v1241_v60 }
 0x116   : > { %v1279_v62 = vpop.f32.mrf.mxu2 }
 0x117   : > { %v1280_v14 = vadd.f32 %v1279_v62, %v1261_v12 }
 0x118   : > { %v1263_v48 = vpop.f32.mrf.mxu1 }
 0x119   : > { %v1298_v63 = vpop.f32.mrf.mxu3  ;;  %v1244_v0 = vpop.f32.mrf.mxu0 }
 0x11a   : > { %v1299_v21 = vadd.f32 %v1298_v63, %v1280_v14  ;;  %v1264_v22 = vadd.f32 %v1263_v48, %v1244_v0 }
 0x11e   : > { %v1282_v1 = vpop.f32.mrf.mxu2 }
 0x11f   : > { %v1283_v26 = vadd.f32 %v1282_v1, %v1264_v22 }
 0x120   : > { %v1265_v54 = vpop.f32.mrf.mxu1 }
 0x121   : > { %v1301_v53 = vpop.f32.mrf.mxu3  ;;  %v1246_v2 = vpop.f32.mrf.mxu0 }
 0x122   : > { %v1302_v30 = vadd.f32 %v1301_v53, %v1283_v26  ;;  %v1266_v34 = vadd.f32 %v1265_v54, %v1246_v2 }
 0x126   : > { %v1284_v57 = vpop.f32.mrf.mxu2 }
 0x127   : > { %v1285_v36 = vadd.f32 %v1284_v57, %v1266_v34 }
 0x128   : > { %v1334_v4 = vpop.f32.mrf.mxu1 }
 0x129   : > { %v1303_v3 = vpop.f32.mrf.mxu3  ;;  %v1315_v44 = vpop.f32.mrf.mxu0 }
 0x12a   : > { %v1335_v5 = vadd.f32 %v1334_v4, %v1315_v44  ;;  %v1304_v41 = vadd.f32 %v1303_v3, %v1285_v36 }
 0x12e   : > { %v1353_v6 = vpop.f32.mrf.mxu2 }
 0x12f   : > { %v1354_v7 = vadd.f32 %v1353_v6, %v1335_v5 }
 0x130   : > { %v1336_v9 = vpop.f32.mrf.mxu1 }
 0x131   : > { %v1372_v56 = vpop.f32.mrf.mxu3  ;;  %v1317_v8 = vpop.f32.mrf.mxu0 }
 0x132   : > { %v1373_v11 = vadd.f32 %v1372_v56, %v1354_v7  ;;  %v1337_v15 = vadd.f32 %v1336_v9, %v1317_v8 }
 0x134   : > { %v1434_v13 = vpack.c.bf16 %v1373_v11, %v1297_v10 }
 0x136   : > { %1442 = vst [vmem:[%s2946_s19 + $0x8] sm:$0xff] %v1434_v13  ;;  %v1355_v16 = vpop.f32.mrf.mxu2 }
 0x137   : > { %v1356_v18 = vadd.f32 %v1355_v16, %v1337_v15 }
 0x138   : > { %v1339_v20 = vpop.f32.mrf.mxu1 }
 0x139   : > { %v1374_v17 = vpop.f32.mrf.mxu3  ;;  %v1320_v19 = vpop.f32.mrf.mxu0 }
 0x13a   : > { %v1375_v23 = vadd.f32 %v1374_v17, %v1356_v18  ;;  %v1340_v25 = vadd.f32 %v1339_v20, %v1320_v19 }
 0x13c   : > { %v1436_v24 = vpack.c.bf16 %v1375_v23, %v1299_v21 }
 0x13e   : > { %1444 = vst [vmem:[%s2946_s19 + $0x18] sm:$0xff] %v1436_v24  ;;  %v1358_v27 = vpop.f32.mrf.mxu2 }
 0x13f   : > { %v1359_v29 = vadd.f32 %v1358_v27, %v1340_v25 }
 0x140   : > { %v1341_v33 = vpop.f32.mrf.mxu1 }
 0x141   : > { %v1377_v28 = vpop.f32.mrf.mxu3  ;;  %v1322_v32 = vpop.f32.mrf.mxu0 }
 0x142   : > { %v1378_v31 = vadd.f32 %v1377_v28, %v1359_v29  ;;  %v1342_v37 = vadd.f32 %v1341_v33, %v1322_v32 }
 0x144   : > { %v1438_v35 = vpack.c.bf16 %v1378_v31, %v1302_v30 }
 0x146   : > { %1446 = vst [vmem:[%s2946_s19 + $0x28] sm:$0xff] %v1438_v35  ;;  %v1360_v38 = vpop.f32.mrf.mxu2 }
 0x147   : > { %v1361_v39 = vadd.f32 %v1360_v38, %v1342_v37 }
 0x149   : > { %v1379_v40 = vpop.f32.mrf.mxu3 }
 0x14a   : > { %v1380_v42 = vadd.f32 %v1379_v40, %v1361_v39 }
 0x14c   : > { %v1440_v43 = vpack.c.bf16 %v1380_v42, %v1304_v41 }
 0x14e   : > { %1448 = vst [vmem:[%s2946_s19 + $0x38] sm:$0xff] %v1440_v43 }
 0x14f   : > { %2440 = shalt.err (!%p2437_p0)
}
 0x150   : > { %s2505_s30 = smov 256   ;;  %s2506_s6 = smov 512  }
 0x151   : > { %s2507_s7 = smov 16  }
 0x152   : > { %2280 = dma.vmem_to_hbm [thread:$0]  (%p2605_p5), %s1466_s16, 1024, %s1468_s21, %s1450_s12, %s2505_s30, %s2506_s6, %s2507_s7  }
 0x153 PF: > { %s1482_s17 = sand.u32 1, %s2479_s9   ;;  %p2291_p3 = pnand %p1579_p11, %p2572_p6 }
 0x154   : > { %s1483_s19 = scalar_lea.sflag [#allocation5], %s1482_s17 }
 0x155   : > { %p2292_p7 = pneg %p2291_p3 }
 0x157   : > { %2474 = dma.done.wait (%p2292_p7), %s1483_s19, 1024  }
 0x158   : > { %2476 = vsyncadd (%p2292_p7), %s1483_s19, 4294966272  ;;  %s19_s14 = sadd.s32 1, %s2499_s14   ;;  %s3007_s9 = smov %s2483_s10 }
 0x159   : > { %p16_p9 = scmp.ge.s32.totalorder %s19_s14, 4   ;;  %s3008_s10 = smov %s2487_s11 }
 0x15a   : > { %s3009_s11 = smov %s2614_s8  ;;  %s3010_s12 = smov %s2495_s13 }
 0x15b   : > { %s3011_s13 = smov %s3013_s29  ;;  %18 = sbr.rel (!%p16_p9) target bundleno = 7 (0x7), region = 87 }
 0x160   :  { %1489 = vsyncpa [#allocation4], 1 }
 0x161   :  { %1491 = vsyncpa [#allocation4 + $0x1], 1 }
 0x162   :  { %1492 = vsyncpa [#allocation7], 1 }
 0x163   :  { %1494 = vsyncpa [#allocation7 + $0x1], 1 }
 0x164   :  { %1495 = vsyncpa [#allocation5], 1 }
 0x165   :  { %1497 = vsyncpa [#allocation5 + $0x1], 1 }

</bundles_post_ra>
